<compile_context>
chip_gen: v6e
topology: v6e:2x2x1
jax: 0.10.0
libtpu: 0.0.40
codegen_flags: <defaults>
</compile_context>

<pallas_src>
import jax
import jax.numpy as jnp
from jax.experimental import pallas as pl
from jax.experimental.pallas import tpu as pltpu

# --- small synthetic config (DistilBERT-shaped, scaled down) ---------------
H = 32            # hidden size
NHEADS = 4
HEAD_DIM = H // NHEADS
FFN = 4 * H       # intermediate size
NLAYERS = 2
VOCAB = 64
MAX_POS = 16
EPS = 1e-12       # DistilBERT LayerNorm eps


# --------------------------- kernel helpers --------------------------------
def _layernorm(x, gamma, beta):
    mu = jnp.mean(x, axis=-1, keepdims=True)
    var = jnp.mean((x - mu) ** 2, axis=-1, keepdims=True)
    return (x - mu) * jax.lax.rsqrt(var + EPS) * gamma + beta


# --------------------------- fused Pallas kernel ----------------------------
def qa_fused_kernel(x_ref, bias_ref, hm_ref, eg_ref, eb_ref,
                    wq_ref, bq_ref, wk_ref, bk_ref, wv_ref, bv_ref,
                    wo_ref, bo_ref, ag_ref, ab_ref,
                    w1_ref, b1_ref, w2_ref, b2_ref, fg_ref, fb_ref,
                    dw_ref, db_ref, o_ref):
    f32 = jnp.float32
    bf16 = jnp.bfloat16
    # (M, K) . (N, K) -> (M, N): contract last dims of both operands
    dn_nt = (((1,), (1,)), ((), ()))

    # ---- embedding LayerNorm over all B*S rows at once ----
    x = _layernorm(x_ref[...].astype(f32), eg_ref[...], eb_ref[...])   # (BS, H)
    bias = bias_ref[...]          # (BS, BS) additive mask: cross-batch & padded keys
    head_mask = hm_ref[...]       # (NHEADS, 1, H) per-head column selectors

    for l in range(NLAYERS):                                           # static unroll
        # ---- Q/K/V projections: single full-width matmuls ----
        xb = x.astype(bf16)
        q = jnp.dot(xb, wq_ref[l], preferred_element_type=f32) + bq_ref[l]  # scaled
        k = jnp.dot(xb, wk_ref[l], preferred_element_type=f32) + bk_ref[l]
        v = jnp.dot(xb, wv_ref[l], preferred_element_type=f32) + bv_ref[l]

        # ---- per-head attention via column masking (no reshapes/transposes) ----
        ctx = jnp.zeros_like(q)                                         # (BS, H)
        for h in range(NHEADS):                                         # static unroll
            s = jax.lax.dot_general(q * head_mask[h], k, dn_nt,
                                    preferred_element_type=f32) + bias  # (BS, BS)
            s = s - jnp.max(s, axis=-1, keepdims=True)
            p = jnp.exp(s)
            p = p * pl.reciprocal(jnp.sum(p, axis=-1, keepdims=True), approx=True)
            ctx = ctx + jnp.dot(p, v, preferred_element_type=f32) * head_mask[h]

        attn_out = jnp.dot(ctx.astype(bf16), wo_ref[l],
                           preferred_element_type=f32) + bo_ref[l]      # (BS, H)
        x = _layernorm(x + attn_out, ag_ref[l], ab_ref[l])

        # ---- feed-forward ----
        h1 = jnp.dot(x.astype(bf16), w1_ref[l],
                     preferred_element_type=f32) + b1_ref[l]            # (BS, FFN)
        # TODO(synk): DistilBERT uses exact (erf) GELU; tanh approximation used here.
        h1 = jax.nn.gelu(h1, approximate=True)
        y = jnp.dot(h1.astype(bf16), w2_ref[l],
                    preferred_element_type=f32) + b2_ref[l]             # (BS, H)
        x = _layernorm(x + y, fg_ref[l], fb_ref[l])

    # ---- decoder fused in: (1,H) . (BS,H)^T -> lane-dense (1, BS) logits row ----
    logits = jax.lax.dot_general(dw_ref[...], x, dn_nt,
                                 preferred_element_type=f32) + db_ref[...]
    o_ref[...] = logits


# --------------------------- pallas_call wrapper -----------------------------
def _rep(shape):
    n = len(shape)
    return pl.BlockSpec(shape, lambda i, _n=n: (0,) * _n)


def pack_params(params):
    """Re-layout parameters for the fused kernel (stacked over layers)."""
    scale = 1.0 / (HEAD_DIM ** 0.5)
    bf16 = jnp.bfloat16
    layers = params["layers"]
    stk = lambda k: jnp.stack([lp[k] for lp in layers], axis=0)

    # per-head column selector masks (NHEADS, 1, H)
    head_mask = (jnp.arange(H)[None, :] // HEAD_DIM ==
                 jnp.arange(NHEADS)[:, None]).astype(jnp.float32).reshape(NHEADS, 1, H)

    return [
        head_mask,
        params["emb_ln_g"], params["emb_ln_b"],
        (stk("wq") * scale).astype(bf16),   # 1/sqrt(d) folded into Q projection
        stk("bq") * scale,
        stk("wk").astype(bf16), stk("bk"),
        stk("wv").astype(bf16), stk("bv"),
        stk("wo").astype(bf16), stk("bo"),
        stk("attn_ln_g"), stk("attn_ln_b"),
        stk("w1").astype(bf16), stk("b1"),
        stk("w2").astype(bf16), stk("b2"),
        stk("ffn_ln_g"), stk("ffn_ln_b"),
        params["dec_w"].reshape(1, H), params["dec_b"],
    ]


# --------------------------- parameter init ---------------------------------
def init_params(key):
    ks = iter(jax.random.split(key, 64))
    nrm = lambda shape: 0.02 * jax.random.normal(next(ks), shape, dtype=jnp.float32)
    params = {
        "word_emb": nrm((VOCAB, H)),
        "pos_emb": nrm((MAX_POS, H)),
        "emb_ln_g": jnp.ones((1, H), jnp.float32),
        "emb_ln_b": jnp.zeros((1, H), jnp.float32),
        "dec_w": nrm((H, 1)),
        "dec_b": jnp.zeros((1, 1), jnp.float32),
        "layers": [],
    }
    for _ in range(NLAYERS):
        params["layers"].append({
            "wq": nrm((H, H)), "bq": jnp.zeros((1, H), jnp.float32),
            "wk": nrm((H, H)), "bk": jnp.zeros((1, H), jnp.float32),
            "wv": nrm((H, H)), "bv": jnp.zeros((1, H), jnp.float32),
            "wo": nrm((H, H)), "bo": jnp.zeros((1, H), jnp.float32),
            "attn_ln_g": jnp.ones((1, H), jnp.float32),
            "attn_ln_b": jnp.zeros((1, H), jnp.float32),
            "w1": nrm((H, FFN)), "b1": jnp.zeros((1, FFN), jnp.float32),
            "w2": nrm((FFN, H)), "b2": jnp.zeros((1, H), jnp.float32),
            "ffn_ln_g": jnp.ones((1, H), jnp.float32),
            "ffn_ln_b": jnp.zeros((1, H), jnp.float32),
        })
    return params


# --------------------------- forward pass ------------------------------------
def qa_model_forward(params, input_ids, attention_mask):
    B, S = input_ids.shape
    BS = B * S

    # embeddings: gather is plain-JAX glue, everything else runs in one fused kernel
    tok = params["word_emb"][input_ids]                      # (B, S, H)
    pos = params["pos_emb"][jnp.arange(S)][None, :, :]       # (1, S, H)
    x2d = (tok + pos).astype(jnp.float32).reshape(BS, H)     # batch folded into rows

    # (BS, BS) additive attention bias: block-diagonal over batch + key padding mask
    row_batch = jnp.repeat(jnp.arange(B), S)                 # (BS,)
    same_batch = row_batch[:, None] == row_batch[None, :]    # (BS, BS)
    key_valid = attention_mask.reshape(BS) != 0              # (BS,)
    bias2d = jnp.where(same_batch & key_valid[None, :], 0.0, -1e9).astype(jnp.float32)

    weights = pack_params(params)
    operands = [x2d, bias2d] + weights

    out = pl.pallas_call(
        qa_fused_kernel,
        out_shape=jax.ShapeDtypeStruct((1, BS), jnp.float32),
        grid=(1,),                                           # whole batch in one step
        in_specs=[_rep(tuple(op.shape)) for op in operands],
        out_specs=pl.BlockSpec((1, BS), lambda i: (0, 0)),
        compiler_params=pltpu.CompilerParams(dimension_semantics=("arbitrary",)),
    )(*operands)

    logits = out.reshape(B, S)[:, :, None]                   # (B, S, 1)
    # torch's .squeeze(1): only removes dim 1 if it has size 1
    if logits.shape[1] == 1:
        logits = jnp.squeeze(logits, axis=1)
    return logits


# --------------------------- main --------------------------------------------
if __name__ == "__main__":
    key = jax.random.PRNGKey(0)
    k_param, k_ids = jax.random.split(key)

    B, S = 2, 8
    params = init_params(k_param)
    input_ids = jax.random.randint(k_ids, (B, S), 0, VOCAB, dtype=jnp.int32)
    attention_mask = jnp.ones((B, S), dtype=jnp.int32).at[1, 6:].set(0)

    logits = qa_model_forward(params, input_ids, attention_mask)
    jax.block_until_ready(logits)

    assert logits.shape == (B, S, 1), logits.shape
    assert jnp.all(jnp.isfinite(logits))
    print("KERNEL_OK")
</pallas_src>

<mosaic_0001>
module attributes {stable_mosaic.version = 11 : i64} {
  func.func @qa_fused_kernel(%arg0: i32, %arg1: memref<16x32xf32, #tpu.memory_space<vmem>>, %arg2: memref<16x16xf32, #tpu.memory_space<vmem>>, %arg3: memref<4x1x32xf32, #tpu.memory_space<vmem>>, %arg4: memref<1x32xf32, #tpu.memory_space<vmem>>, %arg5: memref<1x32xf32, #tpu.memory_space<vmem>>, %arg6: memref<2x32x32xbf16, #tpu.memory_space<vmem>>, %arg7: memref<2x1x32xf32, #tpu.memory_space<vmem>>, %arg8: memref<2x32x32xbf16, #tpu.memory_space<vmem>>, %arg9: memref<2x1x32xf32, #tpu.memory_space<vmem>>, %arg10: memref<2x32x32xbf16, #tpu.memory_space<vmem>>, %arg11: memref<2x1x32xf32, #tpu.memory_space<vmem>>, %arg12: memref<2x32x32xbf16, #tpu.memory_space<vmem>>, %arg13: memref<2x1x32xf32, #tpu.memory_space<vmem>>, %arg14: memref<2x1x32xf32, #tpu.memory_space<vmem>>, %arg15: memref<2x1x32xf32, #tpu.memory_space<vmem>>, %arg16: memref<2x32x128xbf16, #tpu.memory_space<vmem>>, %arg17: memref<2x1x128xf32, #tpu.memory_space<vmem>>, %arg18: memref<2x128x32xbf16, #tpu.memory_space<vmem>>, %arg19: memref<2x1x32xf32, #tpu.memory_space<vmem>>, %arg20: memref<2x1x32xf32, #tpu.memory_space<vmem>>, %arg21: memref<2x1x32xf32, #tpu.memory_space<vmem>>, %arg22: memref<1x32xf32, #tpu.memory_space<vmem>>, %arg23: memref<1x1xf32, #tpu.memory_space<vmem>>, %arg24: memref<1x16xf32, #tpu.memory_space<vmem>>) attributes {dimension_semantics = [#tpu.dimension_semantics<arbitrary>], iteration_bounds = array<i64: 1>, scalar_prefetch = 0 : i64, scratch_operands = 0 : i64, tpu.core_type = #tpu.core_type<tc>, window_params = [{pipeline_mode = #tpu.pipeline_mode<synchronous>, transform_indices = @transform_0, window_bounds = array<i64: 16, 32>}, {pipeline_mode = #tpu.pipeline_mode<synchronous>, transform_indices = @transform_1, window_bounds = array<i64: 16, 16>}, {pipeline_mode = #tpu.pipeline_mode<synchronous>, transform_indices = @transform_2, window_bounds = array<i64: 4, 1, 32>}, {pipeline_mode = #tpu.pipeline_mode<synchronous>, transform_indices = @transform_3, window_bounds = array<i64: 1, 32>}, {pipeline_mode = #tpu.pipeline_mode<synchronous>, transform_indices = @transform_4, window_bounds = array<i64: 1, 32>}, {pipeline_mode = #tpu.pipeline_mode<synchronous>, transform_indices = @transform_5, window_bounds = array<i64: 2, 32, 32>}, {pipeline_mode = #tpu.pipeline_mode<synchronous>, transform_indices = @transform_6, window_bounds = array<i64: 2, 1, 32>}, {pipeline_mode = #tpu.pipeline_mode<synchronous>, transform_indices = @transform_7, window_bounds = array<i64: 2, 32, 32>}, {pipeline_mode = #tpu.pipeline_mode<synchronous>, transform_indices = @transform_8, window_bounds = array<i64: 2, 1, 32>}, {pipeline_mode = #tpu.pipeline_mode<synchronous>, transform_indices = @transform_9, window_bounds = array<i64: 2, 32, 32>}, {pipeline_mode = #tpu.pipeline_mode<synchronous>, transform_indices = @transform_10, window_bounds = array<i64: 2, 1, 32>}, {pipeline_mode = #tpu.pipeline_mode<synchronous>, transform_indices = @transform_11, window_bounds = array<i64: 2, 32, 32>}, {pipeline_mode = #tpu.pipeline_mode<synchronous>, transform_indices = @transform_12, window_bounds = array<i64: 2, 1, 32>}, {pipeline_mode = #tpu.pipeline_mode<synchronous>, transform_indices = @transform_13, window_bounds = array<i64: 2, 1, 32>}, {pipeline_mode = #tpu.pipeline_mode<synchronous>, transform_indices = @transform_14, window_bounds = array<i64: 2, 1, 32>}, {pipeline_mode = #tpu.pipeline_mode<synchronous>, transform_indices = @transform_15, window_bounds = array<i64: 2, 32, 128>}, {pipeline_mode = #tpu.pipeline_mode<synchronous>, transform_indices = @transform_16, window_bounds = array<i64: 2, 1, 128>}, {pipeline_mode = #tpu.pipeline_mode<synchronous>, transform_indices = @transform_17, window_bounds = array<i64: 2, 128, 32>}, {pipeline_mode = #tpu.pipeline_mode<synchronous>, transform_indices = @transform_18, window_bounds = array<i64: 2, 1, 32>}, {pipeline_mode = #tpu.pipeline_mode<synchronous>, transform_indices = @transform_19, window_bounds = array<i64: 2, 1, 32>}, {pipeline_mode = #tpu.pipeline_mode<synchronous>, transform_indices = @transform_20, window_bounds = array<i64: 2, 1, 32>}, {pipeline_mode = #tpu.pipeline_mode<synchronous>, transform_indices = @transform_21, window_bounds = array<i64: 1, 32>}, {pipeline_mode = #tpu.pipeline_mode<synchronous>, transform_indices = @transform_22, window_bounds = array<i64: 1, 1>}, {pipeline_mode = #tpu.pipeline_mode<synchronous>, transform_indices = @transform_23, window_bounds = array<i64: 1, 16>}]} {
    %c0 = arith.constant 0 : index
    %c0_0 = arith.constant 0 : index
    %0 = vector.load %arg1[%c0, %c0_0] : memref<16x32xf32, #tpu.memory_space<vmem>>, vector<16x32xf32>
    %c0_1 = arith.constant 0 : index
    %c0_2 = arith.constant 0 : index
    %1 = vector.load %arg4[%c0_1, %c0_2] : memref<1x32xf32, #tpu.memory_space<vmem>>, vector<1x32xf32>
    %c0_3 = arith.constant 0 : index
    %c0_4 = arith.constant 0 : index
    %2 = vector.load %arg5[%c0_3, %c0_4] : memref<1x32xf32, #tpu.memory_space<vmem>>, vector<1x32xf32>
    %cst = arith.constant dense<0.000000e+00> : vector<16xf32>
    %3 = vector.multi_reduction <add>, %0, %cst [1] : vector<16x32xf32> to vector<16xf32>
    %4 = vector.shape_cast %3 : vector<16xf32> to vector<16x1xf32>
    %cst_5 = arith.constant 3.200000e+01 : f32
    %5 = vector.broadcast %cst_5 : f32 to vector<16x1xf32>
    %6 = arith.divf %4, %5 : vector<16x1xf32>
    %7 = vector.broadcast %6 : vector<16x1xf32> to vector<16x32xf32>
    %8 = arith.subf %0, %7 : vector<16x32xf32>
    %9 = arith.mulf %8, %8 : vector<16x32xf32>
    %cst_6 = arith.constant dense<0.000000e+00> : vector<16xf32>
    %10 = vector.multi_reduction <add>, %9, %cst_6 [1] : vector<16x32xf32> to vector<16xf32>
    %11 = vector.shape_cast %10 : vector<16xf32> to vector<16x1xf32>
    %cst_7 = arith.constant 3.200000e+01 : f32
    %12 = vector.broadcast %cst_7 : f32 to vector<16x1xf32>
    %13 = arith.divf %11, %12 : vector<16x1xf32>
    %14 = vector.broadcast %6 : vector<16x1xf32> to vector<16x32xf32>
    %15 = arith.subf %0, %14 : vector<16x32xf32>
    %cst_8 = arith.constant 9.99999996E-13 : f32
    %16 = vector.broadcast %cst_8 : f32 to vector<16x1xf32>
    %17 = arith.addf %13, %16 : vector<16x1xf32>
    %18 = math.rsqrt %17 : vector<16x1xf32>
    %19 = vector.broadcast %18 : vector<16x1xf32> to vector<16x32xf32>
    %20 = arith.mulf %15, %19 : vector<16x32xf32>
    %21 = vector.broadcast %1 : vector<1x32xf32> to vector<16x32xf32>
    %22 = arith.mulf %20, %21 : vector<16x32xf32>
    %23 = vector.broadcast %2 : vector<1x32xf32> to vector<16x32xf32>
    %24 = arith.addf %22, %23 : vector<16x32xf32>
    %c0_9 = arith.constant 0 : index
    %c0_10 = arith.constant 0 : index
    %25 = vector.load %arg2[%c0_9, %c0_10] : memref<16x16xf32, #tpu.memory_space<vmem>>, vector<16x16xf32>
    %c0_11 = arith.constant 0 : index
    %c0_12 = arith.constant 0 : index
    %c0_13 = arith.constant 0 : index
    %26 = vector.load %arg3[%c0_11, %c0_12, %c0_13] : memref<4x1x32xf32, #tpu.memory_space<vmem>>, vector<4x1x32xf32>
    %27 = arith.truncf %24 : vector<16x32xf32> to vector<16x32xbf16>
    %c0_14 = arith.constant 0 : index
    %c0_15 = arith.constant 0 : index
    %c0_16 = arith.constant 0 : index
    %28 = vector.load %arg6[%c0_14, %c0_15, %c0_16] : memref<2x32x32xbf16, #tpu.memory_space<vmem>>, vector<1x32x32xbf16>
    %29 = vector.shape_cast %28 : vector<1x32x32xbf16> to vector<32x32xbf16>
    %cst_17 = arith.constant dense<0.000000e+00> : vector<16x32xf32>
    %30 = tpu.matmul %27, %29, %cst_17 {dimension_numbers = #tpu.dot_dimension_numbers<[1], [0], [0], [1], [0, 0, 1, 1], [], []>} : vector<16x32xbf16>, vector<32x32xbf16>, vector<16x32xf32> -> vector<16x32xf32>
    %c0_18 = arith.constant 0 : index
    %c0_19 = arith.constant 0 : index
    %c0_20 = arith.constant 0 : index
    %31 = vector.load %arg7[%c0_18, %c0_19, %c0_20] : memref<2x1x32xf32, #tpu.memory_space<vmem>>, vector<1x1x32xf32>
    %32 = vector.shape_cast %31 : vector<1x1x32xf32> to vector<1x32xf32>
    %33 = vector.broadcast %32 : vector<1x32xf32> to vector<16x32xf32>
    %34 = arith.addf %30, %33 : vector<16x32xf32>
    %c0_21 = arith.constant 0 : index
    %c0_22 = arith.constant 0 : index
    %c0_23 = arith.constant 0 : index
    %35 = vector.load %arg8[%c0_21, %c0_22, %c0_23] : memref<2x32x32xbf16, #tpu.memory_space<vmem>>, vector<1x32x32xbf16>
    %36 = vector.shape_cast %35 : vector<1x32x32xbf16> to vector<32x32xbf16>
    %cst_24 = arith.constant dense<0.000000e+00> : vector<16x32xf32>
    %37 = tpu.matmul %27, %36, %cst_24 {dimension_numbers = #tpu.dot_dimension_numbers<[1], [0], [0], [1], [0, 0, 1, 1], [], []>} : vector<16x32xbf16>, vector<32x32xbf16>, vector<16x32xf32> -> vector<16x32xf32>
    %c0_25 = arith.constant 0 : index
    %c0_26 = arith.constant 0 : index
    %c0_27 = arith.constant 0 : index
    %38 = vector.load %arg9[%c0_25, %c0_26, %c0_27] : memref<2x1x32xf32, #tpu.memory_space<vmem>>, vector<1x1x32xf32>
    %39 = vector.shape_cast %38 : vector<1x1x32xf32> to vector<1x32xf32>
    %40 = vector.broadcast %39 : vector<1x32xf32> to vector<16x32xf32>
    %41 = arith.addf %37, %40 : vector<16x32xf32>
    %c0_28 = arith.constant 0 : index
    %c0_29 = arith.constant 0 : index
    %c0_30 = arith.constant 0 : index
    %42 = vector.load %arg10[%c0_28, %c0_29, %c0_30] : memref<2x32x32xbf16, #tpu.memory_space<vmem>>, vector<1x32x32xbf16>
    %43 = vector.shape_cast %42 : vector<1x32x32xbf16> to vector<32x32xbf16>
    %cst_31 = arith.constant dense<0.000000e+00> : vector<16x32xf32>
    %44 = tpu.matmul %27, %43, %cst_31 {dimension_numbers = #tpu.dot_dimension_numbers<[1], [0], [0], [1], [0, 0, 1, 1], [], []>} : vector<16x32xbf16>, vector<32x32xbf16>, vector<16x32xf32> -> vector<16x32xf32>
    %c0_32 = arith.constant 0 : index
    %c0_33 = arith.constant 0 : index
    %c0_34 = arith.constant 0 : index
    %45 = vector.load %arg11[%c0_32, %c0_33, %c0_34] : memref<2x1x32xf32, #tpu.memory_space<vmem>>, vector<1x1x32xf32>
    %46 = vector.shape_cast %45 : vector<1x1x32xf32> to vector<1x32xf32>
    %47 = vector.broadcast %46 : vector<1x32xf32> to vector<16x32xf32>
    %48 = arith.addf %44, %47 : vector<16x32xf32>
    %cst_35 = arith.constant 0.000000e+00 : f32
    %49 = vector.broadcast %cst_35 : f32 to vector<16x32xf32>
    %50 = vector.extract_strided_slice %26 {offsets = [0, 0, 0], sizes = [1, 1, 32], strides = [1, 1, 1]} : vector<4x1x32xf32> to vector<1x1x32xf32>
    %51 = vector.shape_cast %50 : vector<1x1x32xf32> to vector<1x32xf32>
    %52 = vector.broadcast %51 : vector<1x32xf32> to vector<16x32xf32>
    %53 = arith.mulf %34, %52 : vector<16x32xf32>
    %cst_36 = arith.constant dense<0.000000e+00> : vector<16x16xf32>
    %54 = tpu.matmul %53, %41, %cst_36 {dimension_numbers = #tpu.dot_dimension_numbers<[1], [1], [0], [0], [0, 0, 1, 0], [], []>} : vector<16x32xf32>, vector<16x32xf32>, vector<16x16xf32> -> vector<16x16xf32>
    %55 = arith.addf %54, %25 : vector<16x16xf32>
    %cst_37 = arith.constant dense<0xFF800000> : vector<16xf32>
    %56 = vector.multi_reduction <maximumf>, %55, %cst_37 [1] : vector<16x16xf32> to vector<16xf32>
    %57 = vector.shape_cast %56 : vector<16xf32> to vector<16x1xf32>
    %58 = vector.broadcast %57 : vector<16x1xf32> to vector<16x16xf32>
    %59 = arith.subf %55, %58 : vector<16x16xf32>
    %60 = math.exp %59 : vector<16x16xf32>
    %cst_38 = arith.constant dense<0.000000e+00> : vector<16xf32>
    %61 = vector.multi_reduction <add>, %60, %cst_38 [1] : vector<16x16xf32> to vector<16xf32>
    %62 = vector.shape_cast %61 : vector<16xf32> to vector<16x1xf32>
    %63 = tpu.reciprocal %62 {approx = true} : vector<16x1xf32> -> vector<16x1xf32>
    %64 = vector.broadcast %63 : vector<16x1xf32> to vector<16x16xf32>
    %65 = arith.mulf %60, %64 : vector<16x16xf32>
    %cst_39 = arith.constant dense<0.000000e+00> : vector<16x32xf32>
    %66 = tpu.matmul %65, %48, %cst_39 {dimension_numbers = #tpu.dot_dimension_numbers<[1], [0], [0], [1], [0, 0, 1, 1], [], []>} : vector<16x16xf32>, vector<16x32xf32>, vector<16x32xf32> -> vector<16x32xf32>
    %67 = vector.extract_strided_slice %26 {offsets = [0, 0, 0], sizes = [1, 1, 32], strides = [1, 1, 1]} : vector<4x1x32xf32> to vector<1x1x32xf32>
    %68 = vector.shape_cast %67 : vector<1x1x32xf32> to vector<1x32xf32>
    %69 = vector.broadcast %68 : vector<1x32xf32> to vector<16x32xf32>
    %70 = arith.mulf %66, %69 : vector<16x32xf32>
    %71 = arith.addf %49, %70 : vector<16x32xf32>
    %72 = vector.extract_strided_slice %26 {offsets = [1, 0, 0], sizes = [1, 1, 32], strides = [1, 1, 1]} : vector<4x1x32xf32> to vector<1x1x32xf32>
    %73 = vector.shape_cast %72 : vector<1x1x32xf32> to vector<1x32xf32>
    %74 = vector.broadcast %73 : vector<1x32xf32> to vector<16x32xf32>
    %75 = arith.mulf %34, %74 : vector<16x32xf32>
    %cst_40 = arith.constant dense<0.000000e+00> : vector<16x16xf32>
    %76 = tpu.matmul %75, %41, %cst_40 {dimension_numbers = #tpu.dot_dimension_numbers<[1], [1], [0], [0], [0, 0, 1, 0], [], []>} : vector<16x32xf32>, vector<16x32xf32>, vector<16x16xf32> -> vector<16x16xf32>
    %77 = arith.addf %76, %25 : vector<16x16xf32>
    %cst_41 = arith.constant dense<0xFF800000> : vector<16xf32>
    %78 = vector.multi_reduction <maximumf>, %77, %cst_41 [1] : vector<16x16xf32> to vector<16xf32>
    %79 = vector.shape_cast %78 : vector<16xf32> to vector<16x1xf32>
    %80 = vector.broadcast %79 : vector<16x1xf32> to vector<16x16xf32>
    %81 = arith.subf %77, %80 : vector<16x16xf32>
    %82 = math.exp %81 : vector<16x16xf32>
    %cst_42 = arith.constant dense<0.000000e+00> : vector<16xf32>
    %83 = vector.multi_reduction <add>, %82, %cst_42 [1] : vector<16x16xf32> to vector<16xf32>
    %84 = vector.shape_cast %83 : vector<16xf32> to vector<16x1xf32>
    %85 = tpu.reciprocal %84 {approx = true} : vector<16x1xf32> -> vector<16x1xf32>
    %86 = vector.broadcast %85 : vector<16x1xf32> to vector<16x16xf32>
    %87 = arith.mulf %82, %86 : vector<16x16xf32>
    %cst_43 = arith.constant dense<0.000000e+00> : vector<16x32xf32>
    %88 = tpu.matmul %87, %48, %cst_43 {dimension_numbers = #tpu.dot_dimension_numbers<[1], [0], [0], [1], [0, 0, 1, 1], [], []>} : vector<16x16xf32>, vector<16x32xf32>, vector<16x32xf32> -> vector<16x32xf32>
    %89 = vector.extract_strided_slice %26 {offsets = [1, 0, 0], sizes = [1, 1, 32], strides = [1, 1, 1]} : vector<4x1x32xf32> to vector<1x1x32xf32>
    %90 = vector.shape_cast %89 : vector<1x1x32xf32> to vector<1x32xf32>
    %91 = vector.broadcast %90 : vector<1x32xf32> to vector<16x32xf32>
    %92 = arith.mulf %88, %91 : vector<16x32xf32>
    %93 = arith.addf %71, %92 : vector<16x32xf32>
    %94 = vector.extract_strided_slice %26 {offsets = [2, 0, 0], sizes = [1, 1, 32], strides = [1, 1, 1]} : vector<4x1x32xf32> to vector<1x1x32xf32>
    %95 = vector.shape_cast %94 : vector<1x1x32xf32> to vector<1x32xf32>
    %96 = vector.broadcast %95 : vector<1x32xf32> to vector<16x32xf32>
    %97 = arith.mulf %34, %96 : vector<16x32xf32>
    %cst_44 = arith.constant dense<0.000000e+00> : vector<16x16xf32>
    %98 = tpu.matmul %97, %41, %cst_44 {dimension_numbers = #tpu.dot_dimension_numbers<[1], [1], [0], [0], [0, 0, 1, 0], [], []>} : vector<16x32xf32>, vector<16x32xf32>, vector<16x16xf32> -> vector<16x16xf32>
    %99 = arith.addf %98, %25 : vector<16x16xf32>
    %cst_45 = arith.constant dense<0xFF800000> : vector<16xf32>
    %100 = vector.multi_reduction <maximumf>, %99, %cst_45 [1] : vector<16x16xf32> to vector<16xf32>
    %101 = vector.shape_cast %100 : vector<16xf32> to vector<16x1xf32>
    %102 = vector.broadcast %101 : vector<16x1xf32> to vector<16x16xf32>
    %103 = arith.subf %99, %102 : vector<16x16xf32>
    %104 = math.exp %103 : vector<16x16xf32>
    %cst_46 = arith.constant dense<0.000000e+00> : vector<16xf32>
    %105 = vector.multi_reduction <add>, %104, %cst_46 [1] : vector<16x16xf32> to vector<16xf32>
    %106 = vector.shape_cast %105 : vector<16xf32> to vector<16x1xf32>
    %107 = tpu.reciprocal %106 {approx = true} : vector<16x1xf32> -> vector<16x1xf32>
    %108 = vector.broadcast %107 : vector<16x1xf32> to vector<16x16xf32>
    %109 = arith.mulf %104, %108 : vector<16x16xf32>
    %cst_47 = arith.constant dense<0.000000e+00> : vector<16x32xf32>
    %110 = tpu.matmul %109, %48, %cst_47 {dimension_numbers = #tpu.dot_dimension_numbers<[1], [0], [0], [1], [0, 0, 1, 1], [], []>} : vector<16x16xf32>, vector<16x32xf32>, vector<16x32xf32> -> vector<16x32xf32>
    %111 = vector.extract_strided_slice %26 {offsets = [2, 0, 0], sizes = [1, 1, 32], strides = [1, 1, 1]} : vector<4x1x32xf32> to vector<1x1x32xf32>
    %112 = vector.shape_cast %111 : vector<1x1x32xf32> to vector<1x32xf32>
    %113 = vector.broadcast %112 : vector<1x32xf32> to vector<16x32xf32>
    %114 = arith.mulf %110, %113 : vector<16x32xf32>
    %115 = arith.addf %93, %114 : vector<16x32xf32>
    %116 = vector.extract_strided_slice %26 {offsets = [3, 0, 0], sizes = [1, 1, 32], strides = [1, 1, 1]} : vector<4x1x32xf32> to vector<1x1x32xf32>
    %117 = vector.shape_cast %116 : vector<1x1x32xf32> to vector<1x32xf32>
    %118 = vector.broadcast %117 : vector<1x32xf32> to vector<16x32xf32>
    %119 = arith.mulf %34, %118 : vector<16x32xf32>
    %cst_48 = arith.constant dense<0.000000e+00> : vector<16x16xf32>
    %120 = tpu.matmul %119, %41, %cst_48 {dimension_numbers = #tpu.dot_dimension_numbers<[1], [1], [0], [0], [0, 0, 1, 0], [], []>} : vector<16x32xf32>, vector<16x32xf32>, vector<16x16xf32> -> vector<16x16xf32>
    %121 = arith.addf %120, %25 : vector<16x16xf32>
    %cst_49 = arith.constant dense<0xFF800000> : vector<16xf32>
    %122 = vector.multi_reduction <maximumf>, %121, %cst_49 [1] : vector<16x16xf32> to vector<16xf32>
    %123 = vector.shape_cast %122 : vector<16xf32> to vector<16x1xf32>
    %124 = vector.broadcast %123 : vector<16x1xf32> to vector<16x16xf32>
    %125 = arith.subf %121, %124 : vector<16x16xf32>
    %126 = math.exp %125 : vector<16x16xf32>
    %cst_50 = arith.constant dense<0.000000e+00> : vector<16xf32>
    %127 = vector.multi_reduction <add>, %126, %cst_50 [1] : vector<16x16xf32> to vector<16xf32>
    %128 = vector.shape_cast %127 : vector<16xf32> to vector<16x1xf32>
    %129 = tpu.reciprocal %128 {approx = true} : vector<16x1xf32> -> vector<16x1xf32>
    %130 = vector.broadcast %129 : vector<16x1xf32> to vector<16x16xf32>
    %131 = arith.mulf %126, %130 : vector<16x16xf32>
    %cst_51 = arith.constant dense<0.000000e+00> : vector<16x32xf32>
    %132 = tpu.matmul %131, %48, %cst_51 {dimension_numbers = #tpu.dot_dimension_numbers<[1], [0], [0], [1], [0, 0, 1, 1], [], []>} : vector<16x16xf32>, vector<16x32xf32>, vector<16x32xf32> -> vector<16x32xf32>
    %133 = vector.extract_strided_slice %26 {offsets = [3, 0, 0], sizes = [1, 1, 32], strides = [1, 1, 1]} : vector<4x1x32xf32> to vector<1x1x32xf32>
    %134 = vector.shape_cast %133 : vector<1x1x32xf32> to vector<1x32xf32>
    %135 = vector.broadcast %134 : vector<1x32xf32> to vector<16x32xf32>
    %136 = arith.mulf %132, %135 : vector<16x32xf32>
    %137 = arith.addf %115, %136 : vector<16x32xf32>
    %138 = arith.truncf %137 : vector<16x32xf32> to vector<16x32xbf16>
    %c0_52 = arith.constant 0 : index
    %c0_53 = arith.constant 0 : index
    %c0_54 = arith.constant 0 : index
    %139 = vector.load %arg12[%c0_52, %c0_53, %c0_54] : memref<2x32x32xbf16, #tpu.memory_space<vmem>>, vector<1x32x32xbf16>
    %140 = vector.shape_cast %139 : vector<1x32x32xbf16> to vector<32x32xbf16>
    %cst_55 = arith.constant dense<0.000000e+00> : vector<16x32xf32>
    %141 = tpu.matmul %138, %140, %cst_55 {dimension_numbers = #tpu.dot_dimension_numbers<[1], [0], [0], [1], [0, 0, 1, 1], [], []>} : vector<16x32xbf16>, vector<32x32xbf16>, vector<16x32xf32> -> vector<16x32xf32>
    %c0_56 = arith.constant 0 : index
    %c0_57 = arith.constant 0 : index
    %c0_58 = arith.constant 0 : index
    %142 = vector.load %arg13[%c0_56, %c0_57, %c0_58] : memref<2x1x32xf32, #tpu.memory_space<vmem>>, vector<1x1x32xf32>
    %143 = vector.shape_cast %142 : vector<1x1x32xf32> to vector<1x32xf32>
    %144 = vector.broadcast %143 : vector<1x32xf32> to vector<16x32xf32>
    %145 = arith.addf %141, %144 : vector<16x32xf32>
    %146 = arith.addf %24, %145 : vector<16x32xf32>
    %c0_59 = arith.constant 0 : index
    %c0_60 = arith.constant 0 : index
    %c0_61 = arith.constant 0 : index
    %147 = vector.load %arg14[%c0_59, %c0_60, %c0_61] : memref<2x1x32xf32, #tpu.memory_space<vmem>>, vector<1x1x32xf32>
    %148 = vector.shape_cast %147 : vector<1x1x32xf32> to vector<1x32xf32>
    %c0_62 = arith.constant 0 : index
    %c0_63 = arith.constant 0 : index
    %c0_64 = arith.constant 0 : index
    %149 = vector.load %arg15[%c0_62, %c0_63, %c0_64] : memref<2x1x32xf32, #tpu.memory_space<vmem>>, vector<1x1x32xf32>
    %150 = vector.shape_cast %149 : vector<1x1x32xf32> to vector<1x32xf32>
    %cst_65 = arith.constant dense<0.000000e+00> : vector<16xf32>
    %151 = vector.multi_reduction <add>, %146, %cst_65 [1] : vector<16x32xf32> to vector<16xf32>
    %152 = vector.shape_cast %151 : vector<16xf32> to vector<16x1xf32>
    %cst_66 = arith.constant 3.200000e+01 : f32
    %153 = vector.broadcast %cst_66 : f32 to vector<16x1xf32>
    %154 = arith.divf %152, %153 : vector<16x1xf32>
    %155 = vector.broadcast %154 : vector<16x1xf32> to vector<16x32xf32>
    %156 = arith.subf %146, %155 : vector<16x32xf32>
    %157 = arith.mulf %156, %156 : vector<16x32xf32>
    %cst_67 = arith.constant dense<0.000000e+00> : vector<16xf32>
    %158 = vector.multi_reduction <add>, %157, %cst_67 [1] : vector<16x32xf32> to vector<16xf32>
    %159 = vector.shape_cast %158 : vector<16xf32> to vector<16x1xf32>
    %cst_68 = arith.constant 3.200000e+01 : f32
    %160 = vector.broadcast %cst_68 : f32 to vector<16x1xf32>
    %161 = arith.divf %159, %160 : vector<16x1xf32>
    %162 = vector.broadcast %154 : vector<16x1xf32> to vector<16x32xf32>
    %163 = arith.subf %146, %162 : vector<16x32xf32>
    %cst_69 = arith.constant 9.99999996E-13 : f32
    %164 = vector.broadcast %cst_69 : f32 to vector<16x1xf32>
    %165 = arith.addf %161, %164 : vector<16x1xf32>
    %166 = math.rsqrt %165 : vector<16x1xf32>
    %167 = vector.broadcast %166 : vector<16x1xf32> to vector<16x32xf32>
    %168 = arith.mulf %163, %167 : vector<16x32xf32>
    %169 = vector.broadcast %148 : vector<1x32xf32> to vector<16x32xf32>
    %170 = arith.mulf %168, %169 : vector<16x32xf32>
    %171 = vector.broadcast %150 : vector<1x32xf32> to vector<16x32xf32>
    %172 = arith.addf %170, %171 : vector<16x32xf32>
    %173 = arith.truncf %172 : vector<16x32xf32> to vector<16x32xbf16>
    %c0_70 = arith.constant 0 : index
    %c0_71 = arith.constant 0 : index
    %c0_72 = arith.constant 0 : index
    %174 = vector.load %arg16[%c0_70, %c0_71, %c0_72] : memref<2x32x128xbf16, #tpu.memory_space<vmem>>, vector<1x32x128xbf16>
    %175 = vector.shape_cast %174 : vector<1x32x128xbf16> to vector<32x128xbf16>
    %cst_73 = arith.constant dense<0.000000e+00> : vector<16x128xf32>
    %176 = tpu.matmul %173, %175, %cst_73 {dimension_numbers = #tpu.dot_dimension_numbers<[1], [0], [0], [1], [0, 0, 1, 1], [], []>} : vector<16x32xbf16>, vector<32x128xbf16>, vector<16x128xf32> -> vector<16x128xf32>
    %c0_74 = arith.constant 0 : index
    %c0_75 = arith.constant 0 : index
    %c0_76 = arith.constant 0 : index
    %177 = vector.load %arg17[%c0_74, %c0_75, %c0_76] : memref<2x1x128xf32, #tpu.memory_space<vmem>>, vector<1x1x128xf32>
    %178 = vector.shape_cast %177 : vector<1x1x128xf32> to vector<1x128xf32>
    %179 = vector.broadcast %178 : vector<1x128xf32> to vector<16x128xf32>
    %180 = arith.addf %176, %179 : vector<16x128xf32>
    %181 = arith.mulf %180, %180 : vector<16x128xf32>
    %182 = arith.mulf %180, %181 : vector<16x128xf32>
    %cst_77 = arith.constant 4.471500e-02 : f32
    %183 = vector.broadcast %cst_77 : f32 to vector<16x128xf32>
    %184 = arith.mulf %183, %182 : vector<16x128xf32>
    %185 = arith.addf %180, %184 : vector<16x128xf32>
    %cst_78 = arith.constant 0.797884583 : f32
    %186 = vector.broadcast %cst_78 : f32 to vector<16x128xf32>
    %187 = arith.mulf %186, %185 : vector<16x128xf32>
    %188 = math.tanh %187 : vector<16x128xf32>
    %cst_79 = arith.constant 1.000000e+00 : f32
    %189 = vector.broadcast %cst_79 : f32 to vector<16x128xf32>
    %190 = arith.addf %189, %188 : vector<16x128xf32>
    %cst_80 = arith.constant 5.000000e-01 : f32
    %191 = vector.broadcast %cst_80 : f32 to vector<16x128xf32>
    %192 = arith.mulf %191, %190 : vector<16x128xf32>
    %193 = arith.mulf %180, %192 : vector<16x128xf32>
    %194 = arith.truncf %193 : vector<16x128xf32> to vector<16x128xbf16>
    %c0_81 = arith.constant 0 : index
    %c0_82 = arith.constant 0 : index
    %c0_83 = arith.constant 0 : index
    %195 = vector.load %arg18[%c0_81, %c0_82, %c0_83] : memref<2x128x32xbf16, #tpu.memory_space<vmem>>, vector<1x128x32xbf16>
    %196 = vector.shape_cast %195 : vector<1x128x32xbf16> to vector<128x32xbf16>
    %cst_84 = arith.constant dense<0.000000e+00> : vector<16x32xf32>
    %197 = tpu.matmul %194, %196, %cst_84 {dimension_numbers = #tpu.dot_dimension_numbers<[1], [0], [0], [1], [0, 0, 1, 1], [], []>} : vector<16x128xbf16>, vector<128x32xbf16>, vector<16x32xf32> -> vector<16x32xf32>
    %c0_85 = arith.constant 0 : index
    %c0_86 = arith.constant 0 : index
    %c0_87 = arith.constant 0 : index
    %198 = vector.load %arg19[%c0_85, %c0_86, %c0_87] : memref<2x1x32xf32, #tpu.memory_space<vmem>>, vector<1x1x32xf32>
    %199 = vector.shape_cast %198 : vector<1x1x32xf32> to vector<1x32xf32>
    %200 = vector.broadcast %199 : vector<1x32xf32> to vector<16x32xf32>
    %201 = arith.addf %197, %200 : vector<16x32xf32>
    %202 = arith.addf %172, %201 : vector<16x32xf32>
    %c0_88 = arith.constant 0 : index
    %c0_89 = arith.constant 0 : index
    %c0_90 = arith.constant 0 : index
    %203 = vector.load %arg20[%c0_88, %c0_89, %c0_90] : memref<2x1x32xf32, #tpu.memory_space<vmem>>, vector<1x1x32xf32>
    %204 = vector.shape_cast %203 : vector<1x1x32xf32> to vector<1x32xf32>
    %c0_91 = arith.constant 0 : index
    %c0_92 = arith.constant 0 : index
    %c0_93 = arith.constant 0 : index
    %205 = vector.load %arg21[%c0_91, %c0_92, %c0_93] : memref<2x1x32xf32, #tpu.memory_space<vmem>>, vector<1x1x32xf32>
    %206 = vector.shape_cast %205 : vector<1x1x32xf32> to vector<1x32xf32>
    %cst_94 = arith.constant dense<0.000000e+00> : vector<16xf32>
    %207 = vector.multi_reduction <add>, %202, %cst_94 [1] : vector<16x32xf32> to vector<16xf32>
    %208 = vector.shape_cast %207 : vector<16xf32> to vector<16x1xf32>
    %cst_95 = arith.constant 3.200000e+01 : f32
    %209 = vector.broadcast %cst_95 : f32 to vector<16x1xf32>
    %210 = arith.divf %208, %209 : vector<16x1xf32>
    %211 = vector.broadcast %210 : vector<16x1xf32> to vector<16x32xf32>
    %212 = arith.subf %202, %211 : vector<16x32xf32>
    %213 = arith.mulf %212, %212 : vector<16x32xf32>
    %cst_96 = arith.constant dense<0.000000e+00> : vector<16xf32>
    %214 = vector.multi_reduction <add>, %213, %cst_96 [1] : vector<16x32xf32> to vector<16xf32>
    %215 = vector.shape_cast %214 : vector<16xf32> to vector<16x1xf32>
    %cst_97 = arith.constant 3.200000e+01 : f32
    %216 = vector.broadcast %cst_97 : f32 to vector<16x1xf32>
    %217 = arith.divf %215, %216 : vector<16x1xf32>
    %218 = vector.broadcast %210 : vector<16x1xf32> to vector<16x32xf32>
    %219 = arith.subf %202, %218 : vector<16x32xf32>
    %cst_98 = arith.constant 9.99999996E-13 : f32
    %220 = vector.broadcast %cst_98 : f32 to vector<16x1xf32>
    %221 = arith.addf %217, %220 : vector<16x1xf32>
    %222 = math.rsqrt %221 : vector<16x1xf32>
    %223 = vector.broadcast %222 : vector<16x1xf32> to vector<16x32xf32>
    %224 = arith.mulf %219, %223 : vector<16x32xf32>
    %225 = vector.broadcast %204 : vector<1x32xf32> to vector<16x32xf32>
    %226 = arith.mulf %224, %225 : vector<16x32xf32>
    %227 = vector.broadcast %206 : vector<1x32xf32> to vector<16x32xf32>
    %228 = arith.addf %226, %227 : vector<16x32xf32>
    %229 = arith.truncf %228 : vector<16x32xf32> to vector<16x32xbf16>
    %c1 = arith.constant 1 : index
    %c0_99 = arith.constant 0 : index
    %c0_100 = arith.constant 0 : index
    %230 = vector.load %arg6[%c1, %c0_99, %c0_100] : memref<2x32x32xbf16, #tpu.memory_space<vmem>>, vector<1x32x32xbf16>
    %231 = vector.shape_cast %230 : vector<1x32x32xbf16> to vector<32x32xbf16>
    %cst_101 = arith.constant dense<0.000000e+00> : vector<16x32xf32>
    %232 = tpu.matmul %229, %231, %cst_101 {dimension_numbers = #tpu.dot_dimension_numbers<[1], [0], [0], [1], [0, 0, 1, 1], [], []>} : vector<16x32xbf16>, vector<32x32xbf16>, vector<16x32xf32> -> vector<16x32xf32>
    %c1_102 = arith.constant 1 : index
    %c0_103 = arith.constant 0 : index
    %c0_104 = arith.constant 0 : index
    %233 = vector.load %arg7[%c1_102, %c0_103, %c0_104] : memref<2x1x32xf32, #tpu.memory_space<vmem>>, vector<1x1x32xf32>
    %234 = vector.shape_cast %233 : vector<1x1x32xf32> to vector<1x32xf32>
    %235 = vector.broadcast %234 : vector<1x32xf32> to vector<16x32xf32>
    %236 = arith.addf %232, %235 : vector<16x32xf32>
    %c1_105 = arith.constant 1 : index
    %c0_106 = arith.constant 0 : index
    %c0_107 = arith.constant 0 : index
    %237 = vector.load %arg8[%c1_105, %c0_106, %c0_107] : memref<2x32x32xbf16, #tpu.memory_space<vmem>>, vector<1x32x32xbf16>
    %238 = vector.shape_cast %237 : vector<1x32x32xbf16> to vector<32x32xbf16>
    %cst_108 = arith.constant dense<0.000000e+00> : vector<16x32xf32>
    %239 = tpu.matmul %229, %238, %cst_108 {dimension_numbers = #tpu.dot_dimension_numbers<[1], [0], [0], [1], [0, 0, 1, 1], [], []>} : vector<16x32xbf16>, vector<32x32xbf16>, vector<16x32xf32> -> vector<16x32xf32>
    %c1_109 = arith.constant 1 : index
    %c0_110 = arith.constant 0 : index
    %c0_111 = arith.constant 0 : index
    %240 = vector.load %arg9[%c1_109, %c0_110, %c0_111] : memref<2x1x32xf32, #tpu.memory_space<vmem>>, vector<1x1x32xf32>
    %241 = vector.shape_cast %240 : vector<1x1x32xf32> to vector<1x32xf32>
    %242 = vector.broadcast %241 : vector<1x32xf32> to vector<16x32xf32>
    %243 = arith.addf %239, %242 : vector<16x32xf32>
    %c1_112 = arith.constant 1 : index
    %c0_113 = arith.constant 0 : index
    %c0_114 = arith.constant 0 : index
    %244 = vector.load %arg10[%c1_112, %c0_113, %c0_114] : memref<2x32x32xbf16, #tpu.memory_space<vmem>>, vector<1x32x32xbf16>
    %245 = vector.shape_cast %244 : vector<1x32x32xbf16> to vector<32x32xbf16>
    %cst_115 = arith.constant dense<0.000000e+00> : vector<16x32xf32>
    %246 = tpu.matmul %229, %245, %cst_115 {dimension_numbers = #tpu.dot_dimension_numbers<[1], [0], [0], [1], [0, 0, 1, 1], [], []>} : vector<16x32xbf16>, vector<32x32xbf16>, vector<16x32xf32> -> vector<16x32xf32>
    %c1_116 = arith.constant 1 : index
    %c0_117 = arith.constant 0 : index
    %c0_118 = arith.constant 0 : index
    %247 = vector.load %arg11[%c1_116, %c0_117, %c0_118] : memref<2x1x32xf32, #tpu.memory_space<vmem>>, vector<1x1x32xf32>
    %248 = vector.shape_cast %247 : vector<1x1x32xf32> to vector<1x32xf32>
    %249 = vector.broadcast %248 : vector<1x32xf32> to vector<16x32xf32>
    %250 = arith.addf %246, %249 : vector<16x32xf32>
    %cst_119 = arith.constant 0.000000e+00 : f32
    %251 = vector.broadcast %cst_119 : f32 to vector<16x32xf32>
    %252 = vector.extract_strided_slice %26 {offsets = [0, 0, 0], sizes = [1, 1, 32], strides = [1, 1, 1]} : vector<4x1x32xf32> to vector<1x1x32xf32>
    %253 = vector.shape_cast %252 : vector<1x1x32xf32> to vector<1x32xf32>
    %254 = vector.broadcast %253 : vector<1x32xf32> to vector<16x32xf32>
    %255 = arith.mulf %236, %254 : vector<16x32xf32>
    %cst_120 = arith.constant dense<0.000000e+00> : vector<16x16xf32>
    %256 = tpu.matmul %255, %243, %cst_120 {dimension_numbers = #tpu.dot_dimension_numbers<[1], [1], [0], [0], [0, 0, 1, 0], [], []>} : vector<16x32xf32>, vector<16x32xf32>, vector<16x16xf32> -> vector<16x16xf32>
    %257 = arith.addf %256, %25 : vector<16x16xf32>
    %cst_121 = arith.constant dense<0xFF800000> : vector<16xf32>
    %258 = vector.multi_reduction <maximumf>, %257, %cst_121 [1] : vector<16x16xf32> to vector<16xf32>
    %259 = vector.shape_cast %258 : vector<16xf32> to vector<16x1xf32>
    %260 = vector.broadcast %259 : vector<16x1xf32> to vector<16x16xf32>
    %261 = arith.subf %257, %260 : vector<16x16xf32>
    %262 = math.exp %261 : vector<16x16xf32>
    %cst_122 = arith.constant dense<0.000000e+00> : vector<16xf32>
    %263 = vector.multi_reduction <add>, %262, %cst_122 [1] : vector<16x16xf32> to vector<16xf32>
    %264 = vector.shape_cast %263 : vector<16xf32> to vector<16x1xf32>
    %265 = tpu.reciprocal %264 {approx = true} : vector<16x1xf32> -> vector<16x1xf32>
    %266 = vector.broadcast %265 : vector<16x1xf32> to vector<16x16xf32>
    %267 = arith.mulf %262, %266 : vector<16x16xf32>
    %cst_123 = arith.constant dense<0.000000e+00> : vector<16x32xf32>
    %268 = tpu.matmul %267, %250, %cst_123 {dimension_numbers = #tpu.dot_dimension_numbers<[1], [0], [0], [1], [0, 0, 1, 1], [], []>} : vector<16x16xf32>, vector<16x32xf32>, vector<16x32xf32> -> vector<16x32xf32>
    %269 = vector.extract_strided_slice %26 {offsets = [0, 0, 0], sizes = [1, 1, 32], strides = [1, 1, 1]} : vector<4x1x32xf32> to vector<1x1x32xf32>
    %270 = vector.shape_cast %269 : vector<1x1x32xf32> to vector<1x32xf32>
    %271 = vector.broadcast %270 : vector<1x32xf32> to vector<16x32xf32>
    %272 = arith.mulf %268, %271 : vector<16x32xf32>
    %273 = arith.addf %251, %272 : vector<16x32xf32>
    %274 = vector.extract_strided_slice %26 {offsets = [1, 0, 0], sizes = [1, 1, 32], strides = [1, 1, 1]} : vector<4x1x32xf32> to vector<1x1x32xf32>
    %275 = vector.shape_cast %274 : vector<1x1x32xf32> to vector<1x32xf32>
    %276 = vector.broadcast %275 : vector<1x32xf32> to vector<16x32xf32>
    %277 = arith.mulf %236, %276 : vector<16x32xf32>
    %cst_124 = arith.constant dense<0.000000e+00> : vector<16x16xf32>
    %278 = tpu.matmul %277, %243, %cst_124 {dimension_numbers = #tpu.dot_dimension_numbers<[1], [1], [0], [0], [0, 0, 1, 0], [], []>} : vector<16x32xf32>, vector<16x32xf32>, vector<16x16xf32> -> vector<16x16xf32>
    %279 = arith.addf %278, %25 : vector<16x16xf32>
    %cst_125 = arith.constant dense<0xFF800000> : vector<16xf32>
    %280 = vector.multi_reduction <maximumf>, %279, %cst_125 [1] : vector<16x16xf32> to vector<16xf32>
    %281 = vector.shape_cast %280 : vector<16xf32> to vector<16x1xf32>
    %282 = vector.broadcast %281 : vector<16x1xf32> to vector<16x16xf32>
    %283 = arith.subf %279, %282 : vector<16x16xf32>
    %284 = math.exp %283 : vector<16x16xf32>
    %cst_126 = arith.constant dense<0.000000e+00> : vector<16xf32>
    %285 = vector.multi_reduction <add>, %284, %cst_126 [1] : vector<16x16xf32> to vector<16xf32>
    %286 = vector.shape_cast %285 : vector<16xf32> to vector<16x1xf32>
    %287 = tpu.reciprocal %286 {approx = true} : vector<16x1xf32> -> vector<16x1xf32>
    %288 = vector.broadcast %287 : vector<16x1xf32> to vector<16x16xf32>
    %289 = arith.mulf %284, %288 : vector<16x16xf32>
    %cst_127 = arith.constant dense<0.000000e+00> : vector<16x32xf32>
    %290 = tpu.matmul %289, %250, %cst_127 {dimension_numbers = #tpu.dot_dimension_numbers<[1], [0], [0], [1], [0, 0, 1, 1], [], []>} : vector<16x16xf32>, vector<16x32xf32>, vector<16x32xf32> -> vector<16x32xf32>
    %291 = vector.extract_strided_slice %26 {offsets = [1, 0, 0], sizes = [1, 1, 32], strides = [1, 1, 1]} : vector<4x1x32xf32> to vector<1x1x32xf32>
    %292 = vector.shape_cast %291 : vector<1x1x32xf32> to vector<1x32xf32>
    %293 = vector.broadcast %292 : vector<1x32xf32> to vector<16x32xf32>
    %294 = arith.mulf %290, %293 : vector<16x32xf32>
    %295 = arith.addf %273, %294 : vector<16x32xf32>
    %296 = vector.extract_strided_slice %26 {offsets = [2, 0, 0], sizes = [1, 1, 32], strides = [1, 1, 1]} : vector<4x1x32xf32> to vector<1x1x32xf32>
    %297 = vector.shape_cast %296 : vector<1x1x32xf32> to vector<1x32xf32>
    %298 = vector.broadcast %297 : vector<1x32xf32> to vector<16x32xf32>
    %299 = arith.mulf %236, %298 : vector<16x32xf32>
    %cst_128 = arith.constant dense<0.000000e+00> : vector<16x16xf32>
    %300 = tpu.matmul %299, %243, %cst_128 {dimension_numbers = #tpu.dot_dimension_numbers<[1], [1], [0], [0], [0, 0, 1, 0], [], []>} : vector<16x32xf32>, vector<16x32xf32>, vector<16x16xf32> -> vector<16x16xf32>
    %301 = arith.addf %300, %25 : vector<16x16xf32>
    %cst_129 = arith.constant dense<0xFF800000> : vector<16xf32>
    %302 = vector.multi_reduction <maximumf>, %301, %cst_129 [1] : vector<16x16xf32> to vector<16xf32>
    %303 = vector.shape_cast %302 : vector<16xf32> to vector<16x1xf32>
    %304 = vector.broadcast %303 : vector<16x1xf32> to vector<16x16xf32>
    %305 = arith.subf %301, %304 : vector<16x16xf32>
    %306 = math.exp %305 : vector<16x16xf32>
    %cst_130 = arith.constant dense<0.000000e+00> : vector<16xf32>
    %307 = vector.multi_reduction <add>, %306, %cst_130 [1] : vector<16x16xf32> to vector<16xf32>
    %308 = vector.shape_cast %307 : vector<16xf32> to vector<16x1xf32>
    %309 = tpu.reciprocal %308 {approx = true} : vector<16x1xf32> -> vector<16x1xf32>
    %310 = vector.broadcast %309 : vector<16x1xf32> to vector<16x16xf32>
    %311 = arith.mulf %306, %310 : vector<16x16xf32>
    %cst_131 = arith.constant dense<0.000000e+00> : vector<16x32xf32>
    %312 = tpu.matmul %311, %250, %cst_131 {dimension_numbers = #tpu.dot_dimension_numbers<[1], [0], [0], [1], [0, 0, 1, 1], [], []>} : vector<16x16xf32>, vector<16x32xf32>, vector<16x32xf32> -> vector<16x32xf32>
    %313 = vector.extract_strided_slice %26 {offsets = [2, 0, 0], sizes = [1, 1, 32], strides = [1, 1, 1]} : vector<4x1x32xf32> to vector<1x1x32xf32>
    %314 = vector.shape_cast %313 : vector<1x1x32xf32> to vector<1x32xf32>
    %315 = vector.broadcast %314 : vector<1x32xf32> to vector<16x32xf32>
    %316 = arith.mulf %312, %315 : vector<16x32xf32>
    %317 = arith.addf %295, %316 : vector<16x32xf32>
    %318 = vector.extract_strided_slice %26 {offsets = [3, 0, 0], sizes = [1, 1, 32], strides = [1, 1, 1]} : vector<4x1x32xf32> to vector<1x1x32xf32>
    %319 = vector.shape_cast %318 : vector<1x1x32xf32> to vector<1x32xf32>
    %320 = vector.broadcast %319 : vector<1x32xf32> to vector<16x32xf32>
    %321 = arith.mulf %236, %320 : vector<16x32xf32>
    %cst_132 = arith.constant dense<0.000000e+00> : vector<16x16xf32>
    %322 = tpu.matmul %321, %243, %cst_132 {dimension_numbers = #tpu.dot_dimension_numbers<[1], [1], [0], [0], [0, 0, 1, 0], [], []>} : vector<16x32xf32>, vector<16x32xf32>, vector<16x16xf32> -> vector<16x16xf32>
    %323 = arith.addf %322, %25 : vector<16x16xf32>
    %cst_133 = arith.constant dense<0xFF800000> : vector<16xf32>
    %324 = vector.multi_reduction <maximumf>, %323, %cst_133 [1] : vector<16x16xf32> to vector<16xf32>
    %325 = vector.shape_cast %324 : vector<16xf32> to vector<16x1xf32>
    %326 = vector.broadcast %325 : vector<16x1xf32> to vector<16x16xf32>
    %327 = arith.subf %323, %326 : vector<16x16xf32>
    %328 = math.exp %327 : vector<16x16xf32>
    %cst_134 = arith.constant dense<0.000000e+00> : vector<16xf32>
    %329 = vector.multi_reduction <add>, %328, %cst_134 [1] : vector<16x16xf32> to vector<16xf32>
    %330 = vector.shape_cast %329 : vector<16xf32> to vector<16x1xf32>
    %331 = tpu.reciprocal %330 {approx = true} : vector<16x1xf32> -> vector<16x1xf32>
    %332 = vector.broadcast %331 : vector<16x1xf32> to vector<16x16xf32>
    %333 = arith.mulf %328, %332 : vector<16x16xf32>
    %cst_135 = arith.constant dense<0.000000e+00> : vector<16x32xf32>
    %334 = tpu.matmul %333, %250, %cst_135 {dimension_numbers = #tpu.dot_dimension_numbers<[1], [0], [0], [1], [0, 0, 1, 1], [], []>} : vector<16x16xf32>, vector<16x32xf32>, vector<16x32xf32> -> vector<16x32xf32>
    %335 = vector.extract_strided_slice %26 {offsets = [3, 0, 0], sizes = [1, 1, 32], strides = [1, 1, 1]} : vector<4x1x32xf32> to vector<1x1x32xf32>
    %336 = vector.shape_cast %335 : vector<1x1x32xf32> to vector<1x32xf32>
    %337 = vector.broadcast %336 : vector<1x32xf32> to vector<16x32xf32>
    %338 = arith.mulf %334, %337 : vector<16x32xf32>
    %339 = arith.addf %317, %338 : vector<16x32xf32>
    %340 = arith.truncf %339 : vector<16x32xf32> to vector<16x32xbf16>
    %c1_136 = arith.constant 1 : index
    %c0_137 = arith.constant 0 : index
    %c0_138 = arith.constant 0 : index
    %341 = vector.load %arg12[%c1_136, %c0_137, %c0_138] : memref<2x32x32xbf16, #tpu.memory_space<vmem>>, vector<1x32x32xbf16>
    %342 = vector.shape_cast %341 : vector<1x32x32xbf16> to vector<32x32xbf16>
    %cst_139 = arith.constant dense<0.000000e+00> : vector<16x32xf32>
    %343 = tpu.matmul %340, %342, %cst_139 {dimension_numbers = #tpu.dot_dimension_numbers<[1], [0], [0], [1], [0, 0, 1, 1], [], []>} : vector<16x32xbf16>, vector<32x32xbf16>, vector<16x32xf32> -> vector<16x32xf32>
    %c1_140 = arith.constant 1 : index
    %c0_141 = arith.constant 0 : index
    %c0_142 = arith.constant 0 : index
    %344 = vector.load %arg13[%c1_140, %c0_141, %c0_142] : memref<2x1x32xf32, #tpu.memory_space<vmem>>, vector<1x1x32xf32>
    %345 = vector.shape_cast %344 : vector<1x1x32xf32> to vector<1x32xf32>
    %346 = vector.broadcast %345 : vector<1x32xf32> to vector<16x32xf32>
    %347 = arith.addf %343, %346 : vector<16x32xf32>
    %348 = arith.addf %228, %347 : vector<16x32xf32>
    %c1_143 = arith.constant 1 : index
    %c0_144 = arith.constant 0 : index
    %c0_145 = arith.constant 0 : index
    %349 = vector.load %arg14[%c1_143, %c0_144, %c0_145] : memref<2x1x32xf32, #tpu.memory_space<vmem>>, vector<1x1x32xf32>
    %350 = vector.shape_cast %349 : vector<1x1x32xf32> to vector<1x32xf32>
    %c1_146 = arith.constant 1 : index
    %c0_147 = arith.constant 0 : index
    %c0_148 = arith.constant 0 : index
    %351 = vector.load %arg15[%c1_146, %c0_147, %c0_148] : memref<2x1x32xf32, #tpu.memory_space<vmem>>, vector<1x1x32xf32>
    %352 = vector.shape_cast %351 : vector<1x1x32xf32> to vector<1x32xf32>
    %cst_149 = arith.constant dense<0.000000e+00> : vector<16xf32>
    %353 = vector.multi_reduction <add>, %348, %cst_149 [1] : vector<16x32xf32> to vector<16xf32>
    %354 = vector.shape_cast %353 : vector<16xf32> to vector<16x1xf32>
    %cst_150 = arith.constant 3.200000e+01 : f32
    %355 = vector.broadcast %cst_150 : f32 to vector<16x1xf32>
    %356 = arith.divf %354, %355 : vector<16x1xf32>
    %357 = vector.broadcast %356 : vector<16x1xf32> to vector<16x32xf32>
    %358 = arith.subf %348, %357 : vector<16x32xf32>
    %359 = arith.mulf %358, %358 : vector<16x32xf32>
    %cst_151 = arith.constant dense<0.000000e+00> : vector<16xf32>
    %360 = vector.multi_reduction <add>, %359, %cst_151 [1] : vector<16x32xf32> to vector<16xf32>
    %361 = vector.shape_cast %360 : vector<16xf32> to vector<16x1xf32>
    %cst_152 = arith.constant 3.200000e+01 : f32
    %362 = vector.broadcast %cst_152 : f32 to vector<16x1xf32>
    %363 = arith.divf %361, %362 : vector<16x1xf32>
    %364 = vector.broadcast %356 : vector<16x1xf32> to vector<16x32xf32>
    %365 = arith.subf %348, %364 : vector<16x32xf32>
    %cst_153 = arith.constant 9.99999996E-13 : f32
    %366 = vector.broadcast %cst_153 : f32 to vector<16x1xf32>
    %367 = arith.addf %363, %366 : vector<16x1xf32>
    %368 = math.rsqrt %367 : vector<16x1xf32>
    %369 = vector.broadcast %368 : vector<16x1xf32> to vector<16x32xf32>
    %370 = arith.mulf %365, %369 : vector<16x32xf32>
    %371 = vector.broadcast %350 : vector<1x32xf32> to vector<16x32xf32>
    %372 = arith.mulf %370, %371 : vector<16x32xf32>
    %373 = vector.broadcast %352 : vector<1x32xf32> to vector<16x32xf32>
    %374 = arith.addf %372, %373 : vector<16x32xf32>
    %375 = arith.truncf %374 : vector<16x32xf32> to vector<16x32xbf16>
    %c1_154 = arith.constant 1 : index
    %c0_155 = arith.constant 0 : index
    %c0_156 = arith.constant 0 : index
    %376 = vector.load %arg16[%c1_154, %c0_155, %c0_156] : memref<2x32x128xbf16, #tpu.memory_space<vmem>>, vector<1x32x128xbf16>
    %377 = vector.shape_cast %376 : vector<1x32x128xbf16> to vector<32x128xbf16>
    %cst_157 = arith.constant dense<0.000000e+00> : vector<16x128xf32>
    %378 = tpu.matmul %375, %377, %cst_157 {dimension_numbers = #tpu.dot_dimension_numbers<[1], [0], [0], [1], [0, 0, 1, 1], [], []>} : vector<16x32xbf16>, vector<32x128xbf16>, vector<16x128xf32> -> vector<16x128xf32>
    %c1_158 = arith.constant 1 : index
    %c0_159 = arith.constant 0 : index
    %c0_160 = arith.constant 0 : index
    %379 = vector.load %arg17[%c1_158, %c0_159, %c0_160] : memref<2x1x128xf32, #tpu.memory_space<vmem>>, vector<1x1x128xf32>
    %380 = vector.shape_cast %379 : vector<1x1x128xf32> to vector<1x128xf32>
    %381 = vector.broadcast %380 : vector<1x128xf32> to vector<16x128xf32>
    %382 = arith.addf %378, %381 : vector<16x128xf32>
    %383 = arith.mulf %382, %382 : vector<16x128xf32>
    %384 = arith.mulf %382, %383 : vector<16x128xf32>
    %cst_161 = arith.constant 4.471500e-02 : f32
    %385 = vector.broadcast %cst_161 : f32 to vector<16x128xf32>
    %386 = arith.mulf %385, %384 : vector<16x128xf32>
    %387 = arith.addf %382, %386 : vector<16x128xf32>
    %cst_162 = arith.constant 0.797884583 : f32
    %388 = vector.broadcast %cst_162 : f32 to vector<16x128xf32>
    %389 = arith.mulf %388, %387 : vector<16x128xf32>
    %390 = math.tanh %389 : vector<16x128xf32>
    %cst_163 = arith.constant 1.000000e+00 : f32
    %391 = vector.broadcast %cst_163 : f32 to vector<16x128xf32>
    %392 = arith.addf %391, %390 : vector<16x128xf32>
    %cst_164 = arith.constant 5.000000e-01 : f32
    %393 = vector.broadcast %cst_164 : f32 to vector<16x128xf32>
    %394 = arith.mulf %393, %392 : vector<16x128xf32>
    %395 = arith.mulf %382, %394 : vector<16x128xf32>
    %396 = arith.truncf %395 : vector<16x128xf32> to vector<16x128xbf16>
    %c1_165 = arith.constant 1 : index
    %c0_166 = arith.constant 0 : index
    %c0_167 = arith.constant 0 : index
    %397 = vector.load %arg18[%c1_165, %c0_166, %c0_167] : memref<2x128x32xbf16, #tpu.memory_space<vmem>>, vector<1x128x32xbf16>
    %398 = vector.shape_cast %397 : vector<1x128x32xbf16> to vector<128x32xbf16>
    %cst_168 = arith.constant dense<0.000000e+00> : vector<16x32xf32>
    %399 = tpu.matmul %396, %398, %cst_168 {dimension_numbers = #tpu.dot_dimension_numbers<[1], [0], [0], [1], [0, 0, 1, 1], [], []>} : vector<16x128xbf16>, vector<128x32xbf16>, vector<16x32xf32> -> vector<16x32xf32>
    %c1_169 = arith.constant 1 : index
    %c0_170 = arith.constant 0 : index
    %c0_171 = arith.constant 0 : index
    %400 = vector.load %arg19[%c1_169, %c0_170, %c0_171] : memref<2x1x32xf32, #tpu.memory_space<vmem>>, vector<1x1x32xf32>
    %401 = vector.shape_cast %400 : vector<1x1x32xf32> to vector<1x32xf32>
    %402 = vector.broadcast %401 : vector<1x32xf32> to vector<16x32xf32>
    %403 = arith.addf %399, %402 : vector<16x32xf32>
    %404 = arith.addf %374, %403 : vector<16x32xf32>
    %c1_172 = arith.constant 1 : index
    %c0_173 = arith.constant 0 : index
    %c0_174 = arith.constant 0 : index
    %405 = vector.load %arg20[%c1_172, %c0_173, %c0_174] : memref<2x1x32xf32, #tpu.memory_space<vmem>>, vector<1x1x32xf32>
    %406 = vector.shape_cast %405 : vector<1x1x32xf32> to vector<1x32xf32>
    %c1_175 = arith.constant 1 : index
    %c0_176 = arith.constant 0 : index
    %c0_177 = arith.constant 0 : index
    %407 = vector.load %arg21[%c1_175, %c0_176, %c0_177] : memref<2x1x32xf32, #tpu.memory_space<vmem>>, vector<1x1x32xf32>
    %408 = vector.shape_cast %407 : vector<1x1x32xf32> to vector<1x32xf32>
    %cst_178 = arith.constant dense<0.000000e+00> : vector<16xf32>
    %409 = vector.multi_reduction <add>, %404, %cst_178 [1] : vector<16x32xf32> to vector<16xf32>
    %410 = vector.shape_cast %409 : vector<16xf32> to vector<16x1xf32>
    %cst_179 = arith.constant 3.200000e+01 : f32
    %411 = vector.broadcast %cst_179 : f32 to vector<16x1xf32>
    %412 = arith.divf %410, %411 : vector<16x1xf32>
    %413 = vector.broadcast %412 : vector<16x1xf32> to vector<16x32xf32>
    %414 = arith.subf %404, %413 : vector<16x32xf32>
    %415 = arith.mulf %414, %414 : vector<16x32xf32>
    %cst_180 = arith.constant dense<0.000000e+00> : vector<16xf32>
    %416 = vector.multi_reduction <add>, %415, %cst_180 [1] : vector<16x32xf32> to vector<16xf32>
    %417 = vector.shape_cast %416 : vector<16xf32> to vector<16x1xf32>
    %cst_181 = arith.constant 3.200000e+01 : f32
    %418 = vector.broadcast %cst_181 : f32 to vector<16x1xf32>
    %419 = arith.divf %417, %418 : vector<16x1xf32>
    %420 = vector.broadcast %412 : vector<16x1xf32> to vector<16x32xf32>
    %421 = arith.subf %404, %420 : vector<16x32xf32>
    %cst_182 = arith.constant 9.99999996E-13 : f32
    %422 = vector.broadcast %cst_182 : f32 to vector<16x1xf32>
    %423 = arith.addf %419, %422 : vector<16x1xf32>
    %424 = math.rsqrt %423 : vector<16x1xf32>
    %425 = vector.broadcast %424 : vector<16x1xf32> to vector<16x32xf32>
    %426 = arith.mulf %421, %425 : vector<16x32xf32>
    %427 = vector.broadcast %406 : vector<1x32xf32> to vector<16x32xf32>
    %428 = arith.mulf %426, %427 : vector<16x32xf32>
    %429 = vector.broadcast %408 : vector<1x32xf32> to vector<16x32xf32>
    %430 = arith.addf %428, %429 : vector<16x32xf32>
    %c0_183 = arith.constant 0 : index
    %c0_184 = arith.constant 0 : index
    %431 = vector.load %arg22[%c0_183, %c0_184] : memref<1x32xf32, #tpu.memory_space<vmem>>, vector<1x32xf32>
    %cst_185 = arith.constant dense<0.000000e+00> : vector<1x16xf32>
    %432 = tpu.matmul %431, %430, %cst_185 {dimension_numbers = #tpu.dot_dimension_numbers<[1], [1], [0], [0], [0, 0, 1, 0], [], []>} : vector<1x32xf32>, vector<16x32xf32>, vector<1x16xf32> -> vector<1x16xf32>
    %c0_186 = arith.constant 0 : index
    %c0_187 = arith.constant 0 : index
    %433 = vector.load %arg23[%c0_186, %c0_187] : memref<1x1xf32, #tpu.memory_space<vmem>>, vector<1x1xf32>
    %434 = vector.broadcast %433 : vector<1x1xf32> to vector<1x16xf32>
    %435 = arith.addf %432, %434 : vector<1x16xf32>
    %c0_188 = arith.constant 0 : index
    %c0_189 = arith.constant 0 : index
    %436 = vector.load %arg24[%c0_188, %c0_189] : memref<1x16xf32, #tpu.memory_space<vmem>>, vector<1x16xf32>
    tpu.vector_store %arg24[%c0_188, %c0_189], %435 {strides = array<i32>} : memref<1x16xf32, #tpu.memory_space<vmem>>, vector<1x16xf32>,
    return
  }
  func.func @transform_0(%arg0: i32) -> (i32, i32) {
    %c0_i32 = arith.constant 0 : i32
    %c0_i32_0 = arith.constant 0 : i32
    %c0_i32_1 = arith.constant 0 : i32
    return %c0_i32, %c0_i32_0 : i32, i32
  }
  func.func @transform_1(%arg0: i32) -> (i32, i32) {
    %c0_i32 = arith.constant 0 : i32
    %c0_i32_0 = arith.constant 0 : i32
    %c0_i32_1 = arith.constant 0 : i32
    return %c0_i32, %c0_i32_0 : i32, i32
  }
  func.func @transform_2(%arg0: i32) -> (i32, i32, i32) {
    %c0_i32 = arith.constant 0 : i32
    %c0_i32_0 = arith.constant 0 : i32
    %c0_i32_1 = arith.constant 0 : i32
    %c0_i32_2 = arith.constant 0 : i32
    return %c0_i32, %c0_i32_0, %c0_i32_1 : i32, i32, i32
  }
  func.func @transform_3(%arg0: i32) -> (i32, i32) {
    %c0_i32 = arith.constant 0 : i32
    %c0_i32_0 = arith.constant 0 : i32
    %c0_i32_1 = arith.constant 0 : i32
    return %c0_i32, %c0_i32_0 : i32, i32
  }
  func.func @transform_4(%arg0: i32) -> (i32, i32) {
    %c0_i32 = arith.constant 0 : i32
    %c0_i32_0 = arith.constant 0 : i32
    %c0_i32_1 = arith.constant 0 : i32
    return %c0_i32, %c0_i32_0 : i32, i32
  }
  func.func @transform_5(%arg0: i32) -> (i32, i32, i32) {
    %c0_i32 = arith.constant 0 : i32
    %c0_i32_0 = arith.constant 0 : i32
    %c0_i32_1 = arith.constant 0 : i32
    %c0_i32_2 = arith.constant 0 : i32
    return %c0_i32, %c0_i32_0, %c0_i32_1 : i32, i32, i32
  }
  func.func @transform_6(%arg0: i32) -> (i32, i32, i32) {
    %c0_i32 = arith.constant 0 : i32
    %c0_i32_0 = arith.constant 0 : i32
    %c0_i32_1 = arith.constant 0 : i32
    %c0_i32_2 = arith.constant 0 : i32
    return %c0_i32, %c0_i32_0, %c0_i32_1 : i32, i32, i32
  }
  func.func @transform_7(%arg0: i32) -> (i32, i32, i32) {
    %c0_i32 = arith.constant 0 : i32
    %c0_i32_0 = arith.constant 0 : i32
    %c0_i32_1 = arith.constant 0 : i32
    %c0_i32_2 = arith.constant 0 : i32
    return %c0_i32, %c0_i32_0, %c0_i32_1 : i32, i32, i32
  }
  func.func @transform_8(%arg0: i32) -> (i32, i32, i32) {
    %c0_i32 = arith.constant 0 : i32
    %c0_i32_0 = arith.constant 0 : i32
    %c0_i32_1 = arith.constant 0 : i32
    %c0_i32_2 = arith.constant 0 : i32
    return %c0_i32, %c0_i32_0, %c0_i32_1 : i32, i32, i32
  }
  func.func @transform_9(%arg0: i32) -> (i32, i32, i32) {
    %c0_i32 = arith.constant 0 : i32
    %c0_i32_0 = arith.constant 0 : i32
    %c0_i32_1 = arith.constant 0 : i32
    %c0_i32_2 = arith.constant 0 : i32
    return %c0_i32, %c0_i32_0, %c0_i32_1 : i32, i32, i32
  }
  func.func @transform_10(%arg0: i32) -> (i32, i32, i32) {
    %c0_i32 = arith.constant 0 : i32
    %c0_i32_0 = arith.constant 0 : i32
    %c0_i32_1 = arith.constant 0 : i32
    %c0_i32_2 = arith.constant 0 : i32
    return %c0_i32, %c0_i32_0, %c0_i32_1 : i32, i32, i32
  }
  func.func @transform_11(%arg0: i32) -> (i32, i32, i32) {
    %c0_i32 = arith.constant 0 : i32
    %c0_i32_0 = arith.constant 0 : i32
    %c0_i32_1 = arith.constant 0 : i32
    %c0_i32_2 = arith.constant 0 : i32
    return %c0_i32, %c0_i32_0, %c0_i32_1 : i32, i32, i32
  }
  func.func @transform_12(%arg0: i32) -> (i32, i32, i32) {
    %c0_i32 = arith.constant 0 : i32
    %c0_i32_0 = arith.constant 0 : i32
    %c0_i32_1 = arith.constant 0 : i32
    %c0_i32_2 = arith.constant 0 : i32
    return %c0_i32, %c0_i32_0, %c0_i32_1 : i32, i32, i32
  }
  func.func @transform_13(%arg0: i32) -> (i32, i32, i32) {
    %c0_i32 = arith.constant 0 : i32
    %c0_i32_0 = arith.constant 0 : i32
    %c0_i32_1 = arith.constant 0 : i32
    %c0_i32_2 = arith.constant 0 : i32
    return %c0_i32, %c0_i32_0, %c0_i32_1 : i32, i32, i32
  }
  func.func @transform_14(%arg0: i32) -> (i32, i32, i32) {
    %c0_i32 = arith.constant 0 : i32
    %c0_i32_0 = arith.constant 0 : i32
    %c0_i32_1 = arith.constant 0 : i32
    %c0_i32_2 = arith.constant 0 : i32
    return %c0_i32, %c0_i32_0, %c0_i32_1 : i32, i32, i32
  }
  func.func @transform_15(%arg0: i32) -> (i32, i32, i32) {
    %c0_i32 = arith.constant 0 : i32
    %c0_i32_0 = arith.constant 0 : i32
    %c0_i32_1 = arith.constant 0 : i32
    %c0_i32_2 = arith.constant 0 : i32
    return %c0_i32, %c0_i32_0, %c0_i32_1 : i32, i32, i32
  }
  func.func @transform_16(%arg0: i32) -> (i32, i32, i32) {
    %c0_i32 = arith.constant 0 : i32
    %c0_i32_0 = arith.constant 0 : i32
    %c0_i32_1 = arith.constant 0 : i32
    %c0_i32_2 = arith.constant 0 : i32
    return %c0_i32, %c0_i32_0, %c0_i32_1 : i32, i32, i32
  }
  func.func @transform_17(%arg0: i32) -> (i32, i32, i32) {
    %c0_i32 = arith.constant 0 : i32
    %c0_i32_0 = arith.constant 0 : i32
    %c0_i32_1 = arith.constant 0 : i32
    %c0_i32_2 = arith.constant 0 : i32
    return %c0_i32, %c0_i32_0, %c0_i32_1 : i32, i32, i32
  }
  func.func @transform_18(%arg0: i32) -> (i32, i32, i32) {
    %c0_i32 = arith.constant 0 : i32
    %c0_i32_0 = arith.constant 0 : i32
    %c0_i32_1 = arith.constant 0 : i32
    %c0_i32_2 = arith.constant 0 : i32
    return %c0_i32, %c0_i32_0, %c0_i32_1 : i32, i32, i32
  }
  func.func @transform_19(%arg0: i32) -> (i32, i32, i32) {
    %c0_i32 = arith.constant 0 : i32
    %c0_i32_0 = arith.constant 0 : i32
    %c0_i32_1 = arith.constant 0 : i32
    %c0_i32_2 = arith.constant 0 : i32
    return %c0_i32, %c0_i32_0, %c0_i32_1 : i32, i32, i32
  }
  func.func @transform_20(%arg0: i32) -> (i32, i32, i32) {
    %c0_i32 = arith.constant 0 : i32
    %c0_i32_0 = arith.constant 0 : i32
    %c0_i32_1 = arith.constant 0 : i32
    %c0_i32_2 = arith.constant 0 : i32
    return %c0_i32, %c0_i32_0, %c0_i32_1 : i32, i32, i32
  }
  func.func @transform_21(%arg0: i32) -> (i32, i32) {
    %c0_i32 = arith.constant 0 : i32
    %c0_i32_0 = arith.constant 0 : i32
    %c0_i32_1 = arith.constant 0 : i32
    return %c0_i32, %c0_i32_0 : i32, i32
  }
  func.func @transform_22(%arg0: i32) -> (i32, i32) {
    %c0_i32 = arith.constant 0 : i32
    %c0_i32_0 = arith.constant 0 : i32
    %c0_i32_1 = arith.constant 0 : i32
    return %c0_i32, %c0_i32_0 : i32, i32
  }
  func.func @transform_23(%arg0: i32) -> (i32, i32) {
    %c0_i32 = arith.constant 0 : i32
    %c0_i32_0 = arith.constant 0 : i32
    %c0_i32_1 = arith.constant 0 : i32
    return %c0_i32, %c0_i32_0 : i32, i32
  }
}

</mosaic_0001>

<bundles_post_ra>
// kernel: tpu_custom_call.1
= control target key start
LH: loop header
LB: loop body
LE: loop exit
PB: predicated region body
PF: predicated region fallthrough
CT: control target
= control target key end

     0   :  { %s4781_s0 = inlined_call_operand.hbm [shape: f32[16,32], index: 0, kind: input, shape index: {}]   ;;  %s4782_s1 = inlined_call_operand.hbm [shape: f32[16,16], index: 1, kind: input, shape index: {}]   ;;  %s4783_s2 = inlined_call_operand.hbm [shape: f32[4,1,32], index: 2, kind: input, shape index: {}]   ;;  %s4784_s3 = inlined_call_operand.hbm [shape: f32[1,32], index: 3, kind: input, shape index: {}]   ;;  %s4785_s4 = inlined_call_operand.hbm [shape: f32[1,32], index: 4, kind: input, shape index: {}]   ;;  %s4786_s5 = inlined_call_operand.vmem [shape: bf16[2,32,32], index: 5, kind: input, shape index: {}]   ;;  %s4787_s6 = inlined_call_operand.hbm [shape: f32[2,1,32], index: 6, kind: input, shape index: {}]   ;;  %s4788_s7 = inlined_call_operand.vmem [shape: bf16[2,32,32], index: 7, kind: input, shape index: {}]   ;;  %s4789_s8 = inlined_call_operand.hbm [shape: f32[2,1,32], index: 8, kind: input, shape index: {}]   ;;  %s4790_s9 = inlined_call_operand.vmem [shape: bf16[2,32,32], index: 9, kind: input, shape index: {}]   ;;  %s4791_s10 = inlined_call_operand.hbm [shape: f32[2,1,32], index: 10, kind: input, shape index: {}]   ;;  %s4792_s11 = inlined_call_operand.vmem [shape: bf16[2,32,32], index: 11, kind: input, shape index: {}]   ;;  %s4793_s12 = inlined_call_operand.hbm [shape: f32[2,1,32], index: 12, kind: input, shape index: {}]   ;;  %s4794_s13 = inlined_call_operand.hbm [shape: f32[2,1,32], index: 13, kind: input, shape index: {}]   ;;  %s4795_s14 = inlined_call_operand.hbm [shape: f32[2,1,32], index: 14, kind: input, shape index: {}]   ;;  %s4796_s15 = inlined_call_operand.vmem [shape: bf16[2,32,128], index: 15, kind: input, shape index: {}]   ;;  %s4797_s16 = inlined_call_operand.hbm [shape: f32[2,1,128], index: 16, kind: input, shape index: {}]   ;;  %s4798_s17 = inlined_call_operand.vmem [shape: bf16[2,128,32], index: 17, kind: input, shape index: {}]   ;;  %s4799_s18 = inlined_call_operand.vmem [shape: f32[2,1,32], index: 18, kind: input, shape index: {}]   ;;  %s4800_s19 = inlined_call_operand.hbm [shape: f32[2,1,32], index: 19, kind: input, shape index: {}]   ;;  %s4801_s20 = inlined_call_operand.vmem [shape: f32[2,1,32], index: 20, kind: input, shape index: {}]   ;;  %s4802_s21 = inlined_call_operand.vmem [shape: f32[1,32], index: 21, kind: input, shape index: {}]   ;;  %s4803_s22 = inlined_call_operand.<no memory space> [shape: f32[1,1], index: 22, kind: input, shape index: {}]   ;;  %s4804_s23 = inlined_call_operand.hbm [shape: f32[1,16], index: 23, kind: output, shape index: {}]  }
   0x1   :  { %4807 = sst [smem:[#allocation33_spill]] %s4781_s0  ;;  %v28_v0 = vstv %s4803_s22 }
   0x2   :  { %4808 = sst [smem:[#allocation34_spill]] %s4782_s1  ;;  %29 = vst [vmem:[#allocation2] sm:$0x1] %v28_v0 }
   0x3   :  { %4809 = sst [smem:[#allocation35_spill]] %s4783_s2 }
   0x4   :  { %4810 = sst [smem:[#allocation36_spill]] %s4784_s3 }
   0x5   :  { %4811 = sst [smem:[#allocation37_spill]] %s4785_s4 }
   0x6   :  { %4812 = sst [smem:[#allocation38_spill]] %s4786_s5 }
   0x7   :  { %4813 = sst [smem:[#allocation39_spill]] %s4787_s6 }
   0x8   :  { %4814 = sst [smem:[#allocation40_spill]] %s4788_s7 }
   0x9   :  { %30 = vsyncpa [#allocation4], 0 }
   0xa   :  { %31 = vsyncpa [#allocation7], 0 }
   0xb   :  { %32 = vsyncpa [#allocation10], 0 }
   0xc   :  { %33 = vsyncpa [#allocation13], 0 }
   0xd   :  { %34 = vsyncpa [#allocation16], 0 }
   0xe   :  { %35 = vsyncpa [#allocation19], 0 }
   0xf   :  { %36 = vsyncpa [#allocation22], 0 }
  0x10   :  { %37 = vsyncpa [#allocation5], 0  ;;  %s4066_s24 = smov [#allocation6]   ;;  %s4067_s5 = smov [#allocation9]  }
  0x11   :  { %s55_s25 = sshll.u32 %s4066_s24, 4  ;;  %s80_s1 = sshll.u32 %s4067_s5, 4  ;;  %s56_s25 = int_to_ptr.vmem [resolvable:$true] %s55_s25  ;;  %s81_s1 = int_to_ptr.vmem [resolvable:$true] %s80_s1 }
  0x12   :  { %s3778_s26 = scalar_lea.vmem %s56_s25, 256  ;;  %p3783_p1 = scmp.lt.s32.totalorder %s56_s25, %s56_s25 }
  0x13   :  { %p3779_p0 = scmp.ne.s32.totalorder %s56_s25, %s3778_s26  ;;  %p3784_p2 = scmp.lt.s32.totalorder %s3778_s26, %s3778_s26 }
  0x15   :  { %p3785_p3 = por %p3784_p2, %p3783_p1 }
  0x17   :  { %p3786_p4 = pnand %p3785_p3, %p3779_p0 }
  0x19   :  { %3789 = shalt.err (!%p3786_p4)
}
  0x1a   :  { %s4068_s22 = smov 128   ;;  %s4069_s2 = smov 8  }
  0x1b   :  { %s4815_s7 = sld [smem:[#allocation34_spill]]  ;;  %s3798_s28 = scalar_lea.vmem %s81_s1, 16 }
  0x1c   :  { %p3799_p5 = scmp.ne.s32.totalorder %s81_s1, %s3798_s28  ;;  %s3802_s29 = scalar_lea.vmem %s81_s1, 32 }
  0x1d   :  { %p3803_p6 = scmp.lt.s32.totalorder %s81_s1, %s81_s1  ;;  %p3804_p7 = scmp.lt.s32.totalorder %s3802_s29, %s3798_s28 }
  0x1f   :  { %p3805_p8 = por %p3804_p7, %p3803_p6 }
  0x21   :  { %61 = dma.hbm_to_vmem [thread:$0]  %s4815_s7, 256, %s56_s25, [#allocation7], %s4068_s22, %s4068_s22, %s4069_s2  }
  0x22   :  { %p3806_p9 = pnand %p3805_p8, %p3799_p5 }
  0x24   :  { %3809 = shalt.err (!%p3806_p9)
}
  0x25   :  { %s4816_s4 = sld [smem:[#allocation36_spill]]  ;;  %s4070_s30 = smov [#allocation12]  }
  0x26   :  { %s101_s24 = sshll.u32 %s4070_s30, 4  ;;  %s4071_s5 = smov [#allocation15]   ;;  %s102_s24 = int_to_ptr.vmem [resolvable:$true] %s101_s24 }
  0x27   :  { %s129_s26 = sshll.u32 %s4071_s5, 4  ;;  %s3818_s6 = scalar_lea.vmem %s102_s24, 32  ;;  %s130_s26 = int_to_ptr.vmem [resolvable:$true] %s129_s26 }
  0x28   :  { %p3819_p10 = scmp.ne.s32.totalorder %s102_s24, %s3818_s6  ;;  %p3823_p11 = scmp.lt.s32.totalorder %s102_s24, %s102_s24 }
  0x29   :  { %p3824_p12 = scmp.lt.s32.totalorder %s3818_s6, %s3818_s6 }
  0x2b   :  { %83 = dma.hbm_to_vmem [thread:$0]  %s4816_s4, 16, %s81_s1, [#allocation10]  }
  0x2c   :  { %p3825_p13 = por %p3824_p12, %p3823_p11 }
  0x2e   :  { %p3826_p0 = pnand %p3825_p13, %p3819_p10 }
  0x30   :  { %3829 = shalt.err (!%p3826_p0)
}
  0x31   :  { %s4072_s25 = smov 16   ;;  %s4073_s27 = smov 1  }
  0x32   :  { %s4817_s28 = sld [smem:[#allocation39_spill]]  ;;  %s3838_s29 = scalar_lea.vmem %s130_s26, 32 }
  0x33   :  { %p3839_p1 = scmp.ne.s32.totalorder %s130_s26, %s3838_s29  ;;  %p3843_p2 = scmp.lt.s32.totalorder %s130_s26, %s130_s26 }
  0x34   :  { %p3844_p3 = scmp.lt.s32.totalorder %s3838_s29, %s3838_s29 }
  0x36   :  { %p3845_p4 = por %p3844_p3, %p3843_p2 }
  0x38   :  { %107 = dma.hbm_to_vmem [thread:$0]  %s4817_s28, 32, %s102_s24, [#allocation13], %s4072_s25, %s4072_s25, %s4073_s27  }
  0x39   :  { %p3846_p5 = pnand %p3845_p4, %p3839_p1 }
  0x3b   :  { %3849 = shalt.err (!%p3846_p5)
}
  0x3c   :  { %135 = dma.hbm_to_vmem [thread:$0]  %s4791_s10, 32, %s130_s26, [#allocation16], %s4072_s25, %s4072_s25, %s4073_s27  }
  0x3d   :  { %s4074_s4 = smov [#allocation18]   ;;  %s4075_s5 = smov [#allocation21]  }
  0x3e   :  { %s155_s30 = sshll.u32 %s4074_s4, 4  ;;  %s181_s6 = sshll.u32 %s4075_s5, 4  ;;  %s156_s30 = int_to_ptr.vmem [resolvable:$true] %s155_s30  ;;  %s182_s6 = int_to_ptr.vmem [resolvable:$true] %s181_s6 }
  0x3f   :  { %s3858_s24 = scalar_lea.vmem %s156_s30, 32  ;;  %p3863_p7 = scmp.lt.s32.totalorder %s156_s30, %s156_s30 }
  0x40   :  { %p3859_p6 = scmp.ne.s32.totalorder %s156_s30, %s3858_s24  ;;  %p3864_p8 = scmp.lt.s32.totalorder %s3858_s24, %s3858_s24 }
  0x42   :  { %p3865_p9 = por %p3864_p8, %p3863_p7 }
  0x44   :  { %p3866_p10 = pnand %p3865_p9, %p3859_p6 }
  0x46   :  { %3869 = shalt.err (!%p3866_p10)
}
  0x47   :  { %161 = dma.hbm_to_vmem [thread:$0]  %s4794_s13, 32, %s156_s30, [#allocation19], %s4072_s25, %s4072_s25, %s4073_s27  }
  0x48   :  { %s3878_s10 = scalar_lea.vmem %s182_s6, 32  ;;  %p3883_p12 = scmp.lt.s32.totalorder %s182_s6, %s182_s6 }
  0x49   :  { %p3879_p11 = scmp.ne.s32.totalorder %s182_s6, %s3878_s10  ;;  %p3884_p13 = scmp.lt.s32.totalorder %s3878_s10, %s3878_s10 }
  0x4b   :  { %p3885_p0 = por %p3884_p13, %p3883_p12 }
  0x4d   :  { %p3886_p1 = pnand %p3885_p0, %p3879_p11 }
  0x4f   :  { %3889 = shalt.err (!%p3886_p1)
}
  0x50   :  { %187 = dma.hbm_to_vmem [thread:$0]  %s4797_s16, 32, %s182_s6, [#allocation22], %s4072_s25, %s4072_s25, %s4073_s27  }
  0x51   :  { %s4076_s29 = smov [#allocation3]   ;;  %s4077_s0 = smov [#allocation8]  }
  0x52   :  { %s43_s3 = sshll.u32 %s4076_s29, 4  ;;  %s67_s4 = sshll.u32 %s4077_s0, 4  ;;  %s44_s3 = int_to_ptr.vmem [resolvable:$true] %s43_s3  ;;  %s68_s4 = int_to_ptr.vmem [resolvable:$true] %s67_s4 }
  0x53   :  { %s3898_s13 = scalar_lea.vmem %s44_s3, 256  ;;  %p3903_p3 = scmp.lt.s32.totalorder %s44_s3, %s44_s3 }
  0x54   :  { %p3899_p2 = scmp.ne.s32.totalorder %s44_s3, %s3898_s13  ;;  %p3904_p4 = scmp.lt.s32.totalorder %s3898_s13, %s3898_s13 }
  0x56   :  { %p3905_p5 = por %p3904_p4, %p3903_p3 }
  0x58   :  { %p3906_p6 = pnand %p3905_p5, %p3899_p2 }
  0x5a   :  { %3909 = shalt.err (!%p3906_p6)
}
  0x5b   :  { %s4818_s24 = sld [smem:[#allocation33_spill]]  ;;  %s3918_s16 = scalar_lea.vmem %s68_s4, 64 }
  0x5c   :  { %p3919_p7 = scmp.ne.s32.totalorder %s68_s4, %s3918_s16  ;;  %p3923_p8 = scmp.lt.s32.totalorder %s68_s4, %s68_s4 }
  0x5d   :  { %p3924_p9 = scmp.lt.s32.totalorder %s3918_s16, %s3918_s16 }
  0x5f   :  { %p3925_p10 = por %p3924_p9, %p3923_p8 }
  0x61   :  { %49 = dma.hbm_to_vmem [thread:$0]  %s4818_s24, 256, %s44_s3, [#allocation4], %s4068_s22, %s4068_s22, %s4069_s2  }
  0x62   :  { %p3926_p11 = pnand %p3925_p10, %p3919_p7 }
  0x64   :  { %3929 = shalt.err (!%p3926_p11)
}
  0x65   :  { %s4819_s1 = sld [smem:[#allocation35_spill]]  ;;  %s4078_s10 = smov [#allocation11]  }
  0x66   :  { %s90_s26 = sshll.u32 %s4078_s10, 4  ;;  %s4079_s28 = smov [#allocation14]   ;;  %s91_s26 = int_to_ptr.vmem [resolvable:$true] %s90_s26 }
  0x67   :  { %s115_s29 = sshll.u32 %s4079_s28, 4  ;;  %s3938_s22 = scalar_lea.vmem %s91_s26, 16  ;;  %s116_s29 = int_to_ptr.vmem [resolvable:$true] %s115_s29 }
  0x68   :  { %p3939_p12 = scmp.ne.s32.totalorder %s91_s26, %s3938_s22  ;;  %s3942_s2 = scalar_lea.vmem %s91_s26, 32 }
  0x69   :  { %p3943_p13 = scmp.lt.s32.totalorder %s91_s26, %s91_s26  ;;  %p3944_p0 = scmp.lt.s32.totalorder %s3942_s2, %s3938_s22 }
  0x6b   :  { %73 = dma.hbm_to_vmem [thread:$0]  %s4819_s1, 64, %s68_s4, [#allocation7], %s4072_s25, %s4072_s25, %s4073_s27  }
  0x6c   :  { %p3945_p1 = por %p3944_p0, %p3943_p13 }
  0x6e   :  { %p3946_p2 = pnand %p3945_p1, %p3939_p12 }
  0x70   :  { %3949 = shalt.err (!%p3946_p2)
}
  0x71   :  { %s4820_s13 = sld [smem:[#allocation37_spill]]  ;;  %s3958_s30 = scalar_lea.vmem %s116_s29, 32 }
  0x72   :  { %p3959_p3 = scmp.ne.s32.totalorder %s116_s29, %s3958_s30  ;;  %p3963_p4 = scmp.lt.s32.totalorder %s116_s29, %s116_s29 }
  0x73   :  { %p3964_p5 = scmp.lt.s32.totalorder %s3958_s30, %s3958_s30 }
  0x75   :  { %p3965_p6 = por %p3964_p5, %p3963_p4 }
  0x77   :  { %93 = dma.hbm_to_vmem [thread:$0]  %s4820_s13, 16, %s91_s26, [#allocation10]  }
  0x78   :  { %p3966_p7 = pnand %p3965_p6, %p3959_p3 }
  0x7a   :  { %3969 = shalt.err (!%p3966_p7)
}
  0x7b   :  { %121 = dma.hbm_to_vmem [thread:$0]  %s4789_s8, 32, %s116_s29, [#allocation13], %s4072_s25, %s4072_s25, %s4073_s27  }
  0x7c   :  { %s4080_s24 = smov [#allocation17]   ;;  %s4081_s6 = smov [#allocation20]  }
  0x7d   :  { %s143_s16 = sshll.u32 %s4080_s24, 4  ;;  %s167_s7 = sshll.u32 %s4081_s6, 4  ;;  %s144_s16 = int_to_ptr.vmem [resolvable:$true] %s143_s16  ;;  %s168_s7 = int_to_ptr.vmem [resolvable:$true] %s167_s7 }
  0x7e   :  { %s3978_s1 = scalar_lea.vmem %s144_s16, 32  ;;  %p3983_p9 = scmp.lt.s32.totalorder %s144_s16, %s144_s16 }
  0x7f   :  { %p3979_p8 = scmp.ne.s32.totalorder %s144_s16, %s3978_s1  ;;  %p3984_p10 = scmp.lt.s32.totalorder %s3978_s1, %s3978_s1 }
  0x81   :  { %p3985_p11 = por %p3984_p10, %p3983_p9 }
  0x83   :  { %p3986_p12 = pnand %p3985_p11, %p3979_p8 }
  0x85   :  { %3989 = shalt.err (!%p3986_p12)
}
  0x86   :  { %149 = dma.hbm_to_vmem [thread:$0]  %s4793_s12, 32, %s144_s16, [#allocation16], %s4072_s25, %s4072_s25, %s4073_s27  }
  0x87   :  { %s3998_s8 = scalar_lea.vmem %s168_s7, 32  ;;  %p4003_p0 = scmp.lt.s32.totalorder %s168_s7, %s168_s7 }
  0x88   :  { %p3999_p13 = scmp.ne.s32.totalorder %s168_s7, %s3998_s8  ;;  %p4004_p1 = scmp.lt.s32.totalorder %s3998_s8, %s3998_s8 }
  0x8a   :  { %p4005_p2 = por %p4004_p1, %p4003_p0 }
  0x8c   :  { %p4006_p3 = pnand %p4005_p2, %p3999_p13 }
  0x8e   :  { %4009 = shalt.err (!%p4006_p3)
}
  0x8f   :  { %173 = dma.hbm_to_vmem [thread:$0]  %s4795_s14, 32, %s168_s7, [#allocation19], %s4072_s25, %s4072_s25, %s4073_s27  }
  0x90   :  { %s4082_s22 = smov [#allocation23]  }
  0x91   :  { %s197_s2 = sshll.u32 %s4082_s22, 4  ;;  %s198_s2 = int_to_ptr.vmem [resolvable:$true] %s197_s2 }
  0x92   :  { %s4018_s3 = scalar_lea.vmem %s198_s2, 32  ;;  %p4023_p5 = scmp.lt.s32.totalorder %s198_s2, %s198_s2 }
  0x93   :  { %p4019_p4 = scmp.ne.s32.totalorder %s198_s2, %s4018_s3  ;;  %p4024_p6 = scmp.lt.s32.totalorder %s4018_s3, %s4018_s3 }
  0x95   :  { %p4025_p7 = por %p4024_p6, %p4023_p5 }
  0x97   :  { %p4026_p8 = pnand %p4025_p7, %p4019_p4 }
  0x99   :  { %4029 = shalt.err (!%p4026_p8)
}
  0x9a   :  { %203 = dma.hbm_to_vmem [thread:$0]  %s4800_s19, 32, %s198_s2, [#allocation22], %s4072_s25, %s4072_s25, %s4073_s27  }
  0x9b   :  { %4050 = dma.done.wait [#allocation4], 256  }
  0x9c   :  { %4051 = vsyncadd [#allocation4], 4294967040 }
  0x9d   :  { %4052 = dma.done.wait [#allocation7], 320  }
  0x9e   :  { %4053 = vsyncadd [#allocation7], 4294966976 }
  0x9f   :  { %4054 = dma.done.wait [#allocation10], 32  }
  0xa0   :  { %4055 = vsyncadd [#allocation10], 4294967264 }
  0xa1   :  { %4056 = dma.done.wait [#allocation13], 64  }
  0xa2   :  { %4057 = vsyncadd [#allocation13], 4294967232 }
  0xa3   :  { %4058 = dma.done.wait [#allocation16], 64  }
  0xa4   :  { %4059 = vsyncadd [#allocation16], 4294967232 }
  0xa5   :  { %4060 = dma.done.wait [#allocation19], 64  }
  0xa6   :  { %4061 = vsyncadd [#allocation19], 4294967232 }
  0xa7   :  { %4062 = dma.done.wait [#allocation22], 64  }
  0xa8   :  { %4063 = vsyncadd [#allocation22], 4294967232  ;;  %vm254_vm0 = vcmask 261120   ;;  %v250_v1 = vld [vmem:[#allocation3] sm:$0xff]  ;;  %v251_v2 = vld [vmem:[#allocation3 + $0x8] sm:$0xff]  ;;  %s4821_s25 = sld [smem:[#allocation38_spill]] }
  0xa9   :  { %v255_v3 = vsel %vm254_vm0, %v250_v1, 0.0  ;;  %v258_v4 = vsel %vm254_vm0, %v251_v2, 0.0  ;;  %v4083_v16 = vmov 0.0   ;;  %vm4084_vm1 = vmmov 0   ;;  %v3100_v26 = vld [vmem:[#allocation9] ss:$0 sm:$0xff] }
  0xaa   :  { %256 = vadd.xlane.f32.xlu0 %v255_v3  ;;  %3376 = vmatprep.subr.bf16.mxu1 %v4083_v16  ;;  %v3101_v30 = vld [vmem:[#allocation11] ss:$0 sm:$0xff]  ;;  %s4822_s5 = sld [smem:[#allocation40_spill]]  ;;  %v3641_v37 = vld [vmem:[%s4790_s9 + $0x8] sm:$0xff]   ;;  %v4325_v41 = vld [vmem:[#allocation8] ss:$0 sm:$0xff] }
  0xab   :  { %3380 = vmatprep.mubr.msk.bf16.mxu1 %vm4084_vm1, %v4083_v16  ;;  %v3642_v38 = vld [vmem:[%s4790_s9] sm:$0xff]   ;;  %v3102_v39 = vld [vmem:[#allocation12] ss:$0 sm:$0xff]  ;;  %v3106_v51 = vld [vmem:[#allocation14] ss:$0 sm:$0xff]  ;;  %vm595_vm2 = vcmask 130048  }
  0xac   :  { %v4327_v42 = vld [vmem:[#allocation8 + $0x1] ss:$0 sm:$0xff]  ;;  %v4355_v59 = vld [vmem:[#allocation8 + $0x2] ss:$0 sm:$0xff]  ;;  %v3110_v60 = vld [vmem:[#allocation15] ss:$0 sm:$0xff] }
  0xad   :  { %vm3077_vm3 = vcmask 122880  }
  0xae   :  { %259 = vadd.xlane.f32.xlu0 %v258_v4  ;;  %v3637_v15 = vld [vmem:[%s4821_s25 + $0x8] sm:$0xff]   ;;  %v3638_v17 = vld [vmem:[%s4821_s25] sm:$0xff]  }
  0xaf   :  { %3377 = vmatpush3.bf16.msra.mxu1 %v3637_v15 }
  0xb0   :  { %3378 = vmatprep.subr.bf16.mxu1 %v4083_v16  ;;  %v3639_v34 = vld [vmem:[%s4822_s5 + $0x8] sm:$0xff]   ;;  %v3640_v36 = vld [vmem:[%s4822_s5] sm:$0xff]  }
  0xb3   :  { %3379 = vmatpush3.bf16.msra.mxu1 %v3638_v17 }
  0xb4   :  { %3384 = vmatprep.subr.bf16.mxu1 %v4083_v16 }
 0x133   :  { %v257_v5 = vpop.xlane.xlu0 %256 }
 0x134   :  { %v262_v6 = vmul.f32 0.03125, %v257_v5  ;;  %v4395_v5 = vld [vmem:[#allocation6 + $0x8] sm:$0xff] }
 0x136   :  { %v264_v7 = vsub.f32 %v250_v1, %v262_v6 }
 0x137   :  { %v260_v8 = vpop.xlane.xlu0 %259 }
 0x138   :  { %v263_v9 = vmul.f32 0.03125, %v260_v8  ;;  %v266_v10 = vmul.f32 %v264_v7, %v264_v7 }
 0x13a   :  { %v265_v11 = vsub.f32 %v251_v2, %v263_v9  ;;  %v268_v12 = vsel %vm254_vm0, %v266_v10, 0.0 }
 0x13b   :  { %269 = vadd.xlane.f32.xlu1 %v268_v12 }
 0x13c   :  { %v267_v13 = vmul.f32 %v265_v11, %v265_v11 }
 0x13e   :  { %v271_v14 = vsel %vm254_vm0, %v267_v13, 0.0 }
 0x13f   :  { %272 = vadd.xlane.f32.xlu1 %v271_v14 }
 0x1c4   :  { %v270_v18 = vpop.xlane.xlu1 %269 }
 0x1c5   :  { %v274_v19 = vmul.f32 0.03125, %v270_v18 }
 0x1c7   :  { %v276_v20 = vadd.f32 1e-12, %v274_v19 }
 0x1c8   :  { %v273_v21 = vpop.xlane.xlu1 %272 }
 0x1c9   :  { %3673 = vrsqrt.f32 %v276_v20  ;;  %v275_v22 = vmul.f32 0.03125, %v273_v21 }
 0x1cb   :  { %v277_v23 = vadd.f32 1e-12, %v275_v22 }
 0x1cd   :  { %3675 = vrsqrt.f32 %v277_v23 }
 0x1d6   :  { %v3674_v24 = vpop.eup %3673 }
 0x1d7   :  { %v280_v25 = vmul.f32 %v3674_v24, %v264_v7  ;;  %v4397_v7 = vld [vmem:[#allocation6] sm:$0xff] }
 0x1d9   :  { %v288_v29 = vmul.f32 %v3100_v26, %v280_v25 }
 0x1da   :  { %v3676_v27 = vpop.eup %3675 }
 0x1db   :  { %v281_v28 = vmul.f32 %v3676_v27, %v265_v11  ;;  %v4297_v32 = vadd.f32 %v3101_v30, %v288_v29 }
 0x1dd   :  { %v289_v31 = vmul.f32 %v3100_v26, %v281_v28 }
 0x1df   :  { %v4299_v33 = vadd.f32 %v3101_v30, %v289_v31 }
 0x1e1   :  { %v304_v35 = vpack.c.bf16 %v4299_v33, %v4297_v32 }
 0x1e3   :  { %3381 = vmatmul.mubr.msk.bf16.vlgmr.msra.gmra.mxu1 %vm254_vm0, %v304_v35 }
 0x1e4   :  { %3385 = vmatpush3.bf16.msra.mxu1 %v3639_v34  ;;  %3388 = vmatprep.mubr.msk.bf16.mxu1 %vm4084_vm1, %v4083_v16 }
 0x1e5   :  { %3386 = vmatprep.subr.bf16.mxu1 %v4083_v16 }
 0x1e8   :  { %3387 = vmatpush3.bf16.msra.mxu1 %v3640_v36 }
 0x1e9   :  { %3392 = vmatprep.subr.bf16.mxu1 %v4083_v16 }
 0x1eb   :  { %3389 = vmatmul.mubr.msk.bf16.vlgmr.msra.gmra.mxu1 %vm254_vm0, %v304_v35 }
 0x1ec   :  { %3393 = vmatpush3.bf16.msra.mxu1 %v3641_v37  ;;  %3396 = vmatprep.mubr.msk.bf16.mxu1 %vm4084_vm1, %v4083_v16 }
 0x1ed   :  { %3394 = vmatprep.subr.bf16.mxu1 %v4083_v16 }
 0x1f0   :  { %3395 = vmatpush3.bf16.msra.mxu1 %v3642_v38 }
 0x1f3   :  { %3397 = vmatmul.mubr.msk.bf16.vlgmr.msra.gmra.mxu1 %vm254_vm0, %v304_v35 }
 0x2a3   :  { %v365_v40 = vpop.f32.mrf.mxu1 }
 0x2a4   :  { %v4329_v43 = vadd.f32 %v3102_v39, %v365_v40 }
 0x2a5   :  { %v3382_v44 = vpop.f32.mrf.mxu1 }
 0x2a6   :  { %v506_v45 = vmul.f32 %v4325_v41, %v4329_v43  ;;  %v709_v46 = vmul.f32 %v4327_v42, %v4329_v43  ;;  %v905_v2 = vmul.f32 %v4355_v59, %v4329_v43 }
 0x2a7   :  { %v368_v47 = vpop.f32.mrf.mxu1 }
 0x2a8   :  { %3404 = vmatprep.mubr.msk.f32.mxu1 %vm254_vm0, %v506_v45  ;;  %3418 = vmatprep.mubr.msk.f32.mxu0 %vm254_vm0, %v709_v46  ;;  %v4349_v57 = vadd.f32 %v3102_v39, %v368_v47 }
 0x2a9   :  { %v3383_v48 = vpop.f32.mrf.mxu1 }
 0x2aa   :  { %v507_v62 = vmul.f32 %v4325_v41, %v4349_v57  ;;  %v710_v1 = vmul.f32 %v4327_v42, %v4349_v57  ;;  %v906_v4 = vmul.f32 %v4355_v59, %v4349_v57 }
 0x2ab   :  { %v429_v49 = vpop.f32.mrf.mxu1 }
 0x2ac   :  { %v4339_v55 = vadd.f32 %v3106_v51, %v429_v49 }
 0x2ad   :  { %v3390_v50 = vpop.f32.mrf.mxu1 }
 0x2af   :  { %v432_v52 = vpop.f32.mrf.mxu1 }
 0x2b0   :  { %v4337_v53 = vadd.f32 %v3106_v51, %v432_v52 }
 0x2b1   :  { %v3391_v54 = vpop.f32.mrf.mxu1 }
 0x2b2   :  { %3400 = vmatprep.subr.msk.mxu1 %vm254_vm0, %v4337_v53  ;;  %3414 = vmatprep.subr.msk.mxu0 %vm254_vm0, %v4337_v53 }
 0x2b3   :  { %v493_v56 = vpop.f32.mrf.mxu1  ;;  %3401 = vmatpush3.xpose.msk.msra.mxu1 %vm254_vm0, %v4337_v53  ;;  %3415 = vmatpush3.xpose.msk.msra.mxu0 %vm254_vm0, %v4337_v53 }
 0x2b4   :  { %3402 = vmatprep.subr.msk.mxu1 %vm254_vm0, %v4339_v55  ;;  %3416 = vmatprep.subr.msk.mxu0 %vm254_vm0, %v4339_v55  ;;  %v4373_v3 = vadd.f32 %v3110_v60, %v493_v56 }
 0x2b5   :  { %v3398_v58 = vpop.f32.mrf.mxu1 }
 0x2b7   :  { %v496_v61 = vpop.f32.mrf.mxu1  ;;  %3403 = vmatpush3.xpose.msk.msra.mxu1 %vm254_vm0, %v4339_v55  ;;  %3417 = vmatpush3.xpose.msk.msra.mxu0 %vm254_vm0, %v4339_v55 }
 0x2b8   :  { %v4363_v63 = vadd.f32 %v3110_v60, %v496_v61  ;;  %3428 = vmatprep.subr.msk.mxu0 %vm254_vm0, %v4337_v53 }
 0x2b9   :  { %v3399_v0 = vpop.f32.mrf.mxu1 }
 0x2ba   :  { %3405 = vmatmul.mubr.msk.f32.vlgmr.msra.gmra.mxu1 %vm254_vm0, %v507_v62  ;;  %3407 = vmatprep.subr.mxu1 %v4363_v63 }
 0x2bb   :  { %3419 = vmatmul.mubr.msk.f32.vlgmr.msra.gmra.mxu0 %vm254_vm0, %v710_v1  ;;  %3408 = vmatpush3.msra.mxu1 %v4363_v63 }
 0x2bc   :  { %3429 = vmatpush3.xpose.msk.msra.mxu0 %vm254_vm0, %v4337_v53  ;;  %3432 = vmatprep.mubr.msk.f32.mxu0 %vm254_vm0, %v905_v2 }
 0x2bd   :  { %3409 = vmatprep.subr.mxu1 %v4373_v3  ;;  %3430 = vmatprep.subr.msk.mxu0 %vm254_vm0, %v4339_v55 }
 0x2be   :  { %3410 = vmatpush3.msra.mxu1 %v4373_v3 }
 0x2bf   :  { %3421 = vmatprep.subr.mxu1 %v4363_v63 }
 0x2c0   :  { %3431 = vmatpush3.xpose.msk.msra.mxu0 %vm254_vm0, %v4339_v55 }
 0x2c1   :  { %3449 = vmatprep.subr.mxu0 %v4363_v63 }
 0x2c3   :  { %3433 = vmatmul.mubr.msk.f32.vlgmr.msra.gmra.mxu0 %vm254_vm0, %v906_v4 }
 0x2c4   :  { %3450 = vmatpush3.msra.mxu0 %v4363_v63 }
 0x2c5   :  { %3451 = vmatprep.subr.mxu0 %v4373_v3 }
 0x2c6   :  { %3452 = vmatpush3.msra.mxu0 %v4373_v3 }
 0x2c7   :  { %3456 = vmatprep.subr.bf16.mxu0 %v4083_v16 }
 0x37a   :  { %v3406_v6 = vpop.f32.mrf.mxu1 }
 0x37b   :  { %v592_v8 = vadd.f32 %v3406_v6, %v4395_v5  ;;  %v3420_v9 = vpop.f32.mrf.mxu0 }
 0x37c   :  { %v586_v10 = vpop.f32.mrf.mxu1  ;;  %v789_v11 = vadd.f32 %v3420_v9, %v4395_v5 }
 0x37d   :  { %v587_v12 = vadd.f32 %v586_v10, %v4397_v7  ;;  %v783_v13 = vpop.f32.mrf.mxu0  ;;  %v599_v14 = vsel %vm595_vm2, %v592_v8, -inf }
 0x37e   :  { %600 = vmax.xlane.f32.xlu1 %v599_v14  ;;  %v784_v15 = vadd.f32 %v783_v13, %v4397_v7  ;;  %v795_v18 = vsel %vm595_vm2, %v789_v11, -inf }
 0x37f   :  { %v596_v17 = vsel %vm595_vm2, %v587_v12, -inf }
 0x380   :  { %597 = vmax.xlane.f32.xlu0 %v596_v17  ;;  %v792_v20 = vsel %vm595_vm2, %v784_v15, -inf }
 0x382   :  { %796 = vmax.xlane.f32.xlu1 %v795_v18 }
 0x383   :  { %v3434_v19 = vpop.f32.mrf.mxu0 }
 0x384   :  { %v985_v21 = vadd.f32 %v3434_v19, %v4395_v5  ;;  %793 = vmax.xlane.f32.xlu0 %v792_v20 }
 0x385   :  { %v979_v22 = vpop.f32.mrf.mxu0 }
 0x386   :  { %v980_v23 = vadd.f32 %v979_v22, %v4397_v7  ;;  %v991_v24 = vsel %vm595_vm2, %v985_v21, -inf  ;;  %v4425_v22 = vld [vmem:[#allocation8 + $0x3] ss:$0 sm:$0xff] }
 0x387   :  { %992 = vmax.xlane.f32.xlu1 %v991_v24 }
 0x388   :  { %v988_v25 = vsel %vm595_vm2, %v980_v23, -inf }
 0x389   :  { %989 = vmax.xlane.f32.xlu0 %v988_v25  ;;  %v1101_v25 = vmul.f32 %v4425_v22, %v4329_v43 }
 0x407   :  { %v601_v26 = vpop.xlane.xlu1 %600 }
 0x408   :  { %v603_v27 = vsub.f32 %v592_v8, %v601_v26 }
 0x409   :  { %v598_v28 = vpop.xlane.xlu0 %597 }
 0x40a   :  { %v606_v29 = vmul.f32 1.442695, %v603_v27  ;;  %v602_v30 = vsub.f32 %v587_v12, %v598_v28 }
 0x40b   :  { %v797_v31 = vpop.xlane.xlu1 %796 }
 0x40c   :  { %3677 = vpow2.f32 %v606_v29  ;;  %v604_v34 = vmul.f32 1.442695, %v602_v30  ;;  %v799_v35 = vsub.f32 %v789_v11, %v797_v31 }
 0x40d   :  { %v794_v36 = vpop.xlane.xlu0 %793 }
 0x40e   :  { %3679 = vpow2.f32 %v604_v34  ;;  %v802_v37 = vmul.f32 1.442695, %v799_v35  ;;  %v798_v38 = vsub.f32 %v784_v15, %v794_v36 }
 0x410   :  { %3681 = vpow2.f32 %v802_v37  ;;  %v800_v39 = vmul.f32 1.442695, %v798_v38  ;;  %v993_v40 = vpop.xlane.xlu1 %992 }
 0x411   :  { %v995_v44 = vsub.f32 %v985_v21, %v993_v40 }
 0x412   :  { %3683 = vpow2.f32 %v800_v39  ;;  %v990_v45 = vpop.xlane.xlu0 %989 }
 0x413   :  { %v998_v46 = vmul.f32 1.442695, %v995_v44  ;;  %v994_v47 = vsub.f32 %v980_v23, %v990_v45 }
 0x415   :  { %3685 = vpow2.f32 %v998_v46  ;;  %v996_v48 = vmul.f32 1.442695, %v994_v47 }
 0x417   :  { %3687 = vpow2.f32 %v996_v48 }
 0x419   :  { %v3678_v49 = vpop.eup %3677 }
 0x41a   :  { %v611_v50 = vsel %vm595_vm2, %v3678_v49, 0.0 }
 0x41b   :  { %v3680_v51 = vpop.eup %3679  ;;  %612 = vadd.xlane.f32.xlu1 %v611_v50 }
 0x41c   :  { %v608_v52 = vsel %vm595_vm2, %v3680_v51, 0.0 }
 0x41d   :  { %v3682_v54 = vpop.eup %3681  ;;  %609 = vadd.xlane.f32.xlu0 %v608_v52 }
 0x41e   :  { %v807_v56 = vsel %vm595_vm2, %v3682_v54, 0.0 }
 0x41f   :  { %v3684_v58 = vpop.eup %3683  ;;  %808 = vadd.xlane.f32.xlu1 %v807_v56 }
 0x420   :  { %v804_v60 = vsel %vm595_vm2, %v3684_v58, 0.0 }
 0x421   :  { %805 = vadd.xlane.f32.xlu0 %v804_v60 }
 0x422   :  { %v3686_v61 = vpop.eup %3685 }
 0x423   :  { %v1003_v62 = vsel %vm595_vm2, %v3686_v61, 0.0 }
 0x424   :  { %v3688_v0 = vpop.eup %3687  ;;  %1004 = vadd.xlane.f32.xlu1 %v1003_v62 }
 0x425   :  { %v1000_v1 = vsel %vm595_vm2, %v3688_v0, 0.0 }
 0x426   :  { %1001 = vadd.xlane.f32.xlu0 %v1000_v1 }
 0x4a4   :  { %v613_v2 = vpop.xlane.xlu1 %612 }
 0x4a5   :  { %3689 = vrcp.f32 %v613_v2 }
 0x4a6   :  { %v610_v4 = vpop.xlane.xlu0 %609 }
 0x4a7   :  { %3691 = vrcp.f32 %v610_v4 }
 0x4a8   :  { %v809_v6 = vpop.xlane.xlu1 %808 }
 0x4a9   :  { %3693 = vrcp.f32 %v809_v6 }
 0x4aa   :  { %v806_v8 = vpop.xlane.xlu0 %805 }
 0x4ab   :  { %3695 = vrcp.f32 %v806_v8  ;;  %v3643_v8 = vld [vmem:[%s4792_s11 + $0x8] sm:$0xff]  }
 0x4ad   :  { %v1005_v9 = vpop.xlane.xlu1 %1004 }
 0x4ae   :  { %3697 = vrcp.f32 %v1005_v9  ;;  %v3644_v9 = vld [vmem:[%s4792_s11] sm:$0xff]  }
 0x4af   :  { %v1002_v10 = vpop.xlane.xlu0 %1001 }
 0x4b0   :  { %3699 = vrcp.f32 %v1002_v10 }
 0x4b2   :  { %v3690_v11 = vpop.eup %3689 }
 0x4b3   :  { %v617_v14 = vmul.f32 %v3690_v11, %v3678_v49 }
 0x4b4   :  { %v3692_v12 = vpop.eup %3691 }
 0x4b5   :  { %v616_v13 = vmul.f32 %v3692_v12, %v3680_v51 }
 0x4b6   :  { %v3694_v15 = vpop.eup %3693 }
 0x4b7   :  { %3411 = vmatprep.mubr.msk.f32.mxu1 %vm595_vm2, %v616_v13  ;;  %v813_v19 = vmul.f32 %v3694_v15, %v3682_v54 }
 0x4b8   :  { %v3696_v17 = vpop.eup %3695  ;;  %3412 = vmatmul.mubr.msk.f32.vlgmr.msra.gmra.mxu1 %vm595_vm2, %v617_v14 }
 0x4b9   :  { %3422 = vmatpush3.msra.mxu1 %v4363_v63  ;;  %v812_v18 = vmul.f32 %v3696_v17, %v3684_v58 }
 0x4ba   :  { %3423 = vmatprep.subr.mxu1 %v4373_v3 }
 0x4bb   :  { %3424 = vmatpush3.msra.mxu1 %v4373_v3  ;;  %3425 = vmatprep.mubr.msk.f32.mxu1 %vm595_vm2, %v812_v18  ;;  %v3698_v20 = vpop.eup %3697  ;;  %v3142_v18 = vld [vmem:[#allocation17] ss:$0 sm:$0xff] }
 0x4bc   :  { %3435 = vmatprep.subr.mxu1 %v4363_v63  ;;  %3426 = vmatmul.mubr.msk.f32.vlgmr.msra.gmra.mxu1 %vm595_vm2, %v813_v19  ;;  %v1009_v24 = vmul.f32 %v3698_v20, %v3686_v61 }
 0x4bd   :  { %v3700_v21 = vpop.eup %3699  ;;  %3436 = vmatpush3.msra.mxu1 %v4363_v63  ;;  %v1102_v63 = vmul.f32 %v4425_v22, %v4349_v57 }
 0x4be   :  { %3437 = vmatprep.subr.mxu1 %v4373_v3  ;;  %v1008_v23 = vmul.f32 %v3700_v21, %v3688_v0 }
 0x4bf   :  { %3438 = vmatpush3.msra.mxu1 %v4373_v3 }
 0x4c0   :  { %3439 = vmatprep.mubr.msk.f32.mxu1 %vm595_vm2, %v1008_v23  ;;  %3442 = vmatprep.subr.msk.mxu1 %vm254_vm0, %v4337_v53 }
 0x4c1   :  { %3440 = vmatmul.mubr.msk.f32.vlgmr.msra.gmra.mxu1 %vm595_vm2, %v1009_v24 }
 0x4c2   :  { %3443 = vmatpush3.xpose.msk.msra.mxu1 %vm254_vm0, %v4337_v53  ;;  %3446 = vmatprep.mubr.msk.f32.mxu1 %vm254_vm0, %v1101_v25 }
 0x4c3   :  { %3444 = vmatprep.subr.msk.mxu1 %vm254_vm0, %v4339_v55 }
 0x4c6   :  { %3445 = vmatpush3.xpose.msk.msra.mxu1 %vm254_vm0, %v4339_v55 }
 0x4c7   :  { %3464 = vmatprep.subr.bf16.mxu1 %v4083_v16 }
 0x4c9   :  { %3447 = vmatmul.mubr.msk.f32.vlgmr.msra.gmra.mxu1 %vm254_vm0, %v1102_v63 }
 0x4ca   :  { %3468 = vmatprep.mubr.msk.bf16.mxu1 %vm4084_vm1, %v4083_v16 }
 0x578   :  { %v3413_v43 = vpop.f32.mrf.mxu1 }
 0x579   :  { %v700_v26 = vmul.f32 %v3413_v43, %v4325_v41 }
 0x57a   :  { %v690_v53 = vpop.f32.mrf.mxu1 }
 0x57b   :  { %v699_v55 = vmul.f32 %v4325_v41, %v690_v53 }
 0x57c   :  { %v3427_v3 = vpop.f32.mrf.mxu1 }
 0x57d   :  { %v896_v27 = vmul.f32 %v3427_v3, %v4327_v42 }
 0x57e   :  { %v886_v28 = vpop.f32.mrf.mxu1 }
 0x57f   :  { %v898_v29 = vadd.f32 %v896_v27, %v700_v26  ;;  %v895_v57 = vmul.f32 %v4327_v42, %v886_v28 }
 0x581   :  { %v897_v30 = vadd.f32 %v895_v57, %v699_v55  ;;  %v3441_v31 = vpop.f32.mrf.mxu1 }
 0x582   :  { %v1092_v34 = vmul.f32 %v3441_v31, %v4355_v59 }
 0x583   :  { %v1082_v35 = vpop.f32.mrf.mxu1 }
 0x584   :  { %v1094_v36 = vadd.f32 %v1092_v34, %v898_v29  ;;  %v1091_v37 = vmul.f32 %v4355_v59, %v1082_v35  ;;  %v3646_v35 = vld [vmem:[%s4796_s15] sm:$0xff]  }
 0x586   :  { %v1093_v38 = vadd.f32 %v1091_v37, %v897_v30 }
 0x589   :  { %v3448_v39 = vpop.f32.mrf.mxu1 }
 0x58a   :  { %v1181_v40 = vadd.f32 %v3448_v39, %v4395_v5 }
 0x58b   :  { %v1175_v44 = vpop.f32.mrf.mxu1 }
 0x58c   :  { %v1176_v45 = vadd.f32 %v1175_v44, %v4397_v7  ;;  %v1187_v46 = vsel %vm595_vm2, %v1181_v40, -inf }
 0x58d   :  { %1188 = vmax.xlane.f32.xlu1 %v1187_v46 }
 0x58e   :  { %v1184_v47 = vsel %vm595_vm2, %v1176_v45, -inf }
 0x58f   :  { %1185 = vmax.xlane.f32.xlu0 %v1184_v47  ;;  %v3146_v47 = vld [vmem:[#allocation18] ss:$0 sm:$0xff] }
 0x616   :  { %v1189_v48 = vpop.xlane.xlu1 %1188 }
 0x617   :  { %v1191_v49 = vsub.f32 %v1181_v40, %v1189_v48 }
 0x618   :  { %v1186_v50 = vpop.xlane.xlu0 %1185 }
 0x619   :  { %v1194_v51 = vmul.f32 1.442695, %v1191_v49  ;;  %v1190_v52 = vsub.f32 %v1176_v45, %v1186_v50 }
 0x61b   :  { %3701 = vpow2.f32 %v1194_v51  ;;  %v1192_v54 = vmul.f32 1.442695, %v1190_v52  ;;  %v3147_v51 = vld [vmem:[#allocation20] ss:$0 sm:$0xff] }
 0x61d   :  { %3703 = vpow2.f32 %v1192_v54 }
 0x628   :  { %v3702_v56 = vpop.eup %3701 }
 0x629   :  { %v1199_v58 = vsel %vm595_vm2, %v3702_v56, 0.0 }
 0x62a   :  { %v3704_v60 = vpop.eup %3703  ;;  %1200 = vadd.xlane.f32.xlu1 %v1199_v58 }
 0x62b   :  { %v1196_v61 = vsel %vm595_vm2, %v3704_v60, 0.0 }
 0x62c   :  { %1197 = vadd.xlane.f32.xlu0 %v1196_v61  ;;  %v3648_v61 = vld [vmem:[%s4798_s17 + $0x30] sm:$0xff]  }
 0x6b3   :  { %v1201_v62 = vpop.xlane.xlu1 %1200 }
 0x6b4   :  { %3705 = vrcp.f32 %v1201_v62  ;;  %v3649_v62 = vld [vmem:[%s4798_s17 + $0x28] sm:$0xff]  }
 0x6b5   :  { %v1198_v0 = vpop.xlane.xlu0 %1197 }
 0x6b6   :  { %3707 = vrcp.f32 %v1198_v0  ;;  %v3650_v0 = vld [vmem:[%s4798_s17 + $0x20] sm:$0xff]  }
 0x6c1   :  { %v3706_v1 = vpop.eup %3705 }
 0x6c2   :  { %v1205_v6 = vmul.f32 %v3706_v1, %v3702_v56  ;;  %v3651_v1 = vld [vmem:[%s4798_s17 + $0x18] sm:$0xff]  }
 0x6c3   :  { %v3708_v2 = vpop.eup %3707 }
 0x6c4   :  { %v1204_v4 = vmul.f32 %v3708_v2, %v3704_v60  ;;  %v3647_v60 = vld [vmem:[%s4798_s17 + $0x38] sm:$0xff]   ;;  %v3652_v2 = vld [vmem:[%s4798_s17 + $0x10] sm:$0xff]  }
 0x6c6   :  { %3453 = vmatprep.mubr.msk.f32.mxu0 %vm595_vm2, %v1204_v4  ;;  %v3653_v4 = vld [vmem:[%s4798_s17 + $0x8] sm:$0xff]  }
 0x6c7   :  { %3454 = vmatmul.mubr.msk.f32.vlgmr.msra.gmra.mxu0 %vm595_vm2, %v1205_v6  ;;  %v3654_v6 = vld [vmem:[%s4798_s17] sm:$0xff]  }
 0x6c8   :  { %3460 = vmatprep.mubr.msk.bf16.mxu0 %vm4084_vm1, %v4083_v16  ;;  %3457 = vmatpush3.bf16.msra.mxu0 %v3643_v8  ;;  %v3148_v8 = vld [vmem:[#allocation21] ss:$0 sm:$0xff] }
 0x6c9   :  { %3458 = vmatprep.subr.bf16.mxu0 %v4083_v16 }
 0x6cc   :  { %3459 = vmatpush3.bf16.msra.mxu0 %v3644_v9 }
 0x6cd   :  { %3472 = vmatprep.subr.bf16.mxu0 %v4083_v16 }
 0x787   :  { %v3455_v10 = vpop.f32.mrf.mxu0 }
 0x788   :  { %v1288_v11 = vmul.f32 %v3455_v10, %v4425_v22 }
 0x789   :  { %v1278_v12 = vpop.f32.mrf.mxu0 }
 0x78a   :  { %v1287_v13 = vmul.f32 %v4425_v22, %v1278_v12  ;;  %v1290_v14 = vadd.f32 %v1288_v11, %v1094_v36 }
 0x78c   :  { %v1289_v15 = vadd.f32 %v1287_v13, %v1093_v38 }
 0x78e   :  { %v1291_v17 = vpack.c.bf16 %v1290_v14, %v1289_v15 }
 0x790   :  { %3461 = vmatmul.mubr.msk.bf16.vlgmr.msra.gmra.mxu0 %vm254_vm0, %v1291_v17 }
 0x791   :  { %3488 = vmatprep.mubr.msk.bf16.mxu0 %vm4084_vm1, %v4083_v16  ;;  %3473 = vmatpush3.bf16.msra.mxu0 %v3647_v60 }
 0x792   :  { %3474 = vmatprep.subr.bf16.mxu0 %v4083_v16 }
 0x795   :  { %3475 = vmatpush3.bf16.msra.mxu0 %v3648_v61 }
 0x796   :  { %3476 = vmatprep.subr.bf16.mxu0 %v4083_v16 }
 0x799   :  { %3477 = vmatpush3.bf16.msra.mxu0 %v3649_v62 }
 0x79a   :  { %3478 = vmatprep.subr.bf16.mxu0 %v4083_v16 }
 0x79d   :  { %3479 = vmatpush3.bf16.msra.mxu0 %v3650_v0 }
 0x79e   :  { %3480 = vmatprep.subr.bf16.mxu0 %v4083_v16 }
 0x7a1   :  { %3481 = vmatpush3.bf16.msra.mxu0 %v3651_v1 }
 0x7a2   :  { %3482 = vmatprep.subr.bf16.mxu0 %v4083_v16 }
 0x7a5   :  { %3483 = vmatpush3.bf16.msra.mxu0 %v3652_v2 }
 0x7a6   :  { %3484 = vmatprep.subr.bf16.mxu0 %v4083_v16 }
 0x7a9   :  { %3485 = vmatpush3.bf16.msra.mxu0 %v3653_v4 }
 0x7aa   :  { %3486 = vmatprep.subr.bf16.mxu0 %v4083_v16 }
 0x7ad   :  { %3487 = vmatpush3.bf16.msra.mxu0 %v3654_v6 }
 0x850   :  { %v1352_v19 = vpop.f32.mrf.mxu0 }
 0x851   :  { %v1353_v20 = vadd.f32 %v3142_v18, %v1352_v19 }
 0x852   :  { %v3462_v21 = vpop.f32.mrf.mxu0 }
 0x853   :  { %v1359_v23 = vadd.f32 %v1353_v20, %v4297_v32 }
 0x854   :  { %v1355_v24 = vpop.f32.mrf.mxu0 }
 0x855   :  { %v1356_v25 = vadd.f32 %v3142_v18, %v1355_v24  ;;  %v1363_v63 = vsel %vm254_vm0, %v1359_v23, 0.0 }
 0x856   :  { %1364 = vadd.xlane.f32.xlu0 %v1363_v63  ;;  %v3463_v43 = vpop.f32.mrf.mxu0 }
 0x857   :  { %v1360_v53 = vadd.f32 %v1356_v25, %v4299_v33  ;;  %v3645_v33 = vld [vmem:[%s4796_s15 + $0x8] sm:$0xff]  }
 0x858   :  { %3465 = vmatpush3.bf16.msra.mxu1 %v3645_v33 }
 0x859   :  { %v1366_v3 = vsel %vm254_vm0, %v1360_v53, 0.0  ;;  %3466 = vmatprep.subr.bf16.mxu1 %v4083_v16 }
 0x85a   :  { %1367 = vadd.xlane.f32.xlu1 %v1366_v3 }
 0x85c   :  { %3467 = vmatpush3.bf16.msra.mxu1 %v3646_v35 }
 0x85d   :  { %3492 = vmatprep.subr.bf16.mxu1 %v4083_v16 }
 0x8df   :  { %v1365_v26 = vpop.xlane.xlu0 %1364 }
 0x8e0   :  { %v1369_v27 = vmul.f32 0.03125, %v1365_v26 }
 0x8e2   :  { %v1371_v28 = vsub.f32 %v1359_v23, %v1369_v27 }
 0x8e3   :  { %v1368_v55 = vpop.xlane.xlu1 %1367 }
 0x8e4   :  { %v1370_v29 = vmul.f32 0.03125, %v1368_v55  ;;  %v1373_v57 = vmul.f32 %v1371_v28, %v1371_v28 }
 0x8e6   :  { %v1372_v30 = vsub.f32 %v1360_v53, %v1370_v29  ;;  %v1375_v32 = vsel %vm254_vm0, %v1373_v57, 0.0 }
 0x8e7   :  { %1376 = vadd.xlane.f32.xlu0 %v1375_v32 }
 0x8e8   :  { %v1374_v31 = vmul.f32 %v1372_v30, %v1372_v30 }
 0x8ea   :  { %v1378_v34 = vsel %vm254_vm0, %v1374_v31, 0.0 }
 0x8eb   :  { %1379 = vadd.xlane.f32.xlu1 %v1378_v34 }
 0x970   :  { %v1377_v36 = vpop.xlane.xlu0 %1376 }
 0x971   :  { %v1381_v37 = vmul.f32 0.03125, %v1377_v36 }
 0x973   :  { %v1383_v38 = vadd.f32 1e-12, %v1381_v37 }
 0x974   :  { %v1380_v39 = vpop.xlane.xlu1 %1379 }
 0x975   :  { %3709 = vrsqrt.f32 %v1383_v38  ;;  %v1382_v40 = vmul.f32 0.03125, %v1380_v39 }
 0x977   :  { %v1384_v44 = vadd.f32 1e-12, %v1382_v40 }
 0x979   :  { %3711 = vrsqrt.f32 %v1384_v44 }
 0x982   :  { %v3710_v45 = vpop.eup %3709 }
 0x983   :  { %v1387_v46 = vmul.f32 %v3710_v45, %v1371_v28 }
 0x985   :  { %v1395_v50 = vmul.f32 %v3146_v47, %v1387_v46 }
 0x986   :  { %v3712_v48 = vpop.eup %3711 }
 0x987   :  { %v1388_v49 = vmul.f32 %v3712_v48, %v1372_v30  ;;  %v1403_v54 = vadd.f32 %v3147_v51, %v1395_v50  ;;  %v3152_v30 = vld [vmem:[%s4799_s18] ss:$0 sm:$0xff] }
 0x989   :  { %v1396_v52 = vmul.f32 %v3146_v47, %v1388_v49 }
 0x98b   :  { %v4492_v56 = vadd.f32 %v3147_v51, %v1396_v52 }
 0x98d   :  { %v1405_v58 = vpack.c.bf16 %v4492_v56, %v1403_v54 }
 0x98f   :  { %3469 = vmatmul.mubr.msk.bf16.vlgmr.msra.gmra.mxu1 %vm254_vm0, %v1405_v58  ;;  %v3656_v58 = vld [vmem:[%s4821_s25 + $0x10] sm:$0xff]  }
 0x990   :  { %3496 = vmatprep.mubr.msk.bf16.mxu1 %vm4084_vm1, %v4083_v16 }
 0xa4f   :  { %v1466_v9 = vpop.f32.mrf.mxu1 }
 0xa50   :  { %v1467_v10 = vadd.f32 %v3148_v8, %v1466_v9 }
 0xa51   :  { %v3470_v11 = vpop.f32.mrf.mxu1 }
 0xa52   :  { %v1473_v12 = vmul.f32 %v1467_v10, %v1467_v10 }
 0xa53   :  { %v1469_v13 = vpop.f32.mrf.mxu1 }
 0xa54   :  { %v1475_v14 = vmul.f32 %v1473_v12, %v1467_v10  ;;  %v1470_v15 = vadd.f32 %v3148_v8, %v1469_v13  ;;  %v3161_v8 = vld [vmem:[#allocation23] ss:$0 sm:$0xff]  ;;  %v3162_v12 = vld [vmem:[%s4801_s20] ss:$0 sm:$0xff] }
 0xa55   :  { %v3471_v17 = vpop.f32.mrf.mxu1 }
 0xa56   :  { %v1477_v18 = vmul.f32 0.044715, %v1475_v14  ;;  %v1474_v19 = vmul.f32 %v1470_v15, %v1470_v15  ;;  %v3657_v17 = vld [vmem:[%s4822_s5 + $0x18] sm:$0xff]  }
 0xa58   :  { %v1479_v20 = vadd.f32 %v1477_v18, %v1467_v10  ;;  %v1476_v21 = vmul.f32 %v1474_v19, %v1470_v15  ;;  %v3658_v19 = vld [vmem:[%s4822_s5 + $0x10] sm:$0xff]  }
 0xa5a   :  { %v1481_v23 = vmul.f32 0.7978846, %v1479_v20  ;;  %v1478_v24 = vmul.f32 0.044715, %v1476_v21  ;;  %v3659_v20 = vld [vmem:[%s4790_s9 + $0x18] sm:$0xff]   ;;  %v3660_v21 = vld [vmem:[%s4790_s9 + $0x10] sm:$0xff]  }
 0xa5c   :  { %3713 = vtanh.f32 %v1481_v23  ;;  %v1480_v25 = vadd.f32 %v1478_v24, %v1470_v15  ;;  %v3167_v23 = vld [vmem:[#allocation12 + $0x1] ss:$0 sm:$0xff] }
 0xa5e   :  { %v1482_v63 = vmul.f32 0.7978846, %v1480_v25 }
 0xa60   :  { %3715 = vtanh.f32 %v1482_v63 }
 0xa69   :  { %v3714_v43 = vpop.eup %3713 }
 0xa6a   :  { %v1485_v53 = vadd.f32 1.0, %v3714_v43 }
 0xa6c   :  { %v1487_v26 = vmul.f32 0.5, %v1485_v53 }
 0xa6d   :  { %v3716_v3 = vpop.eup %3715 }
 0xa6e   :  { %v1486_v27 = vadd.f32 1.0, %v3716_v3  ;;  %v1489_v55 = vmul.f32 %v1487_v26, %v1467_v10 }
 0xa70   :  { %v1488_v28 = vmul.f32 0.5, %v1486_v27 }
 0xa72   :  { %v1490_v29 = vmul.f32 %v1488_v28, %v1470_v15 }
 0xa74   :  { %v1491_v57 = vpack.c.bf16 %v1490_v29, %v1489_v55  ;;  %v3175_v55 = vld [vmem:[#allocation14 + $0x1] ss:$0 sm:$0xff] }
 0xa76   :  { %3489 = vmatmul.mubr.bf16.vlgmr.msra.gmra.mxu0 %v1491_v57 }
 0xb36   :  { %v1597_v32 = vpop.f32.mrf.mxu0 }
 0xb37   :  { %v1598_v31 = vadd.f32 %v3152_v30, %v1597_v32 }
 0xb38   :  { %v3490_v34 = vpop.f32.mrf.mxu0 }
 0xb39   :  { %v1604_v33 = vadd.f32 %v1598_v31, %v1403_v54 }
 0xb3a   :  { %v1600_v35 = vpop.f32.mrf.mxu0 }
 0xb3b   :  { %v1601_v36 = vadd.f32 %v3152_v30, %v1600_v35  ;;  %v1608_v37 = vsel %vm254_vm0, %v1604_v33, 0.0  ;;  %v3183_v35 = vld [vmem:[#allocation15 + $0x1] ss:$0 sm:$0xff] }
 0xb3c   :  { %1609 = vadd.xlane.f32.xlu0 %v1608_v37  ;;  %v3491_v38 = vpop.f32.mrf.mxu0 }
 0xb3d   :  { %v1605_v39 = vadd.f32 %v1601_v36, %v4492_v56  ;;  %v3655_v56 = vld [vmem:[%s4821_s25 + $0x18] sm:$0xff]  }
 0xb3e   :  { %3493 = vmatpush3.bf16.msra.mxu1 %v3655_v56 }
 0xb3f   :  { %v1611_v40 = vsel %vm254_vm0, %v1605_v39, 0.0  ;;  %3494 = vmatprep.subr.bf16.mxu1 %v4083_v16 }
 0xb40   :  { %1612 = vadd.xlane.f32.xlu1 %v1611_v40 }
 0xb42   :  { %3495 = vmatpush3.bf16.msra.mxu1 %v3656_v58 }
 0xb43   :  { %3500 = vmatprep.subr.bf16.mxu1 %v4083_v16 }
 0xbc5   :  { %v1610_v44 = vpop.xlane.xlu0 %1609 }
 0xbc6   :  { %v1614_v45 = vmul.f32 0.03125, %v1610_v44 }
 0xbc8   :  { %v1616_v46 = vsub.f32 %v1604_v33, %v1614_v45 }
 0xbc9   :  { %v1613_v47 = vpop.xlane.xlu1 %1612 }
 0xbca   :  { %v1615_v48 = vmul.f32 0.03125, %v1613_v47  ;;  %v1618_v49 = vmul.f32 %v1616_v46, %v1616_v46 }
 0xbcc   :  { %v1617_v50 = vsub.f32 %v1605_v39, %v1615_v48  ;;  %v1620_v51 = vsel %vm254_vm0, %v1618_v49, 0.0 }
 0xbcd   :  { %1621 = vadd.xlane.f32.xlu0 %v1620_v51 }
 0xbce   :  { %v1619_v52 = vmul.f32 %v1617_v50, %v1617_v50 }
 0xbd0   :  { %v1623_v54 = vsel %vm254_vm0, %v1619_v52, 0.0 }
 0xbd1   :  { %1624 = vadd.xlane.f32.xlu1 %v1623_v54 }
 0xc56   :  { %v1622_v60 = vpop.xlane.xlu0 %1621 }
 0xc57   :  { %v1626_v61 = vmul.f32 0.03125, %v1622_v60 }
 0xc59   :  { %v1628_v62 = vadd.f32 1e-12, %v1626_v61 }
 0xc5a   :  { %v1625_v0 = vpop.xlane.xlu1 %1624 }
 0xc5b   :  { %3717 = vrsqrt.f32 %v1628_v62  ;;  %v1627_v1 = vmul.f32 0.03125, %v1625_v0 }
 0xc5d   :  { %v1629_v2 = vadd.f32 1e-12, %v1627_v1 }
 0xc5f   :  { %3719 = vrsqrt.f32 %v1629_v2 }
 0xc68   :  { %v3718_v4 = vpop.eup %3717 }
 0xc69   :  { %v1632_v6 = vmul.f32 %v3718_v4, %v1616_v46 }
 0xc6b   :  { %v1640_v11 = vmul.f32 %v3161_v8, %v1632_v6 }
 0xc6c   :  { %v3720_v9 = vpop.eup %3719 }
 0xc6d   :  { %v1633_v10 = vmul.f32 %v3720_v9, %v1617_v50  ;;  %v4548_v14 = vadd.f32 %v3162_v12, %v1640_v11 }
 0xc6f   :  { %v1641_v13 = vmul.f32 %v3161_v8, %v1633_v10 }
 0xc71   :  { %v4550_v15 = vadd.f32 %v3162_v12, %v1641_v13 }
 0xc73   :  { %v1650_v18 = vpack.c.bf16 %v4550_v15, %v4548_v14 }
 0xc75   :  { %3497 = vmatmul.mubr.msk.bf16.vlgmr.msra.gmra.mxu1 %vm254_vm0, %v1650_v18 }
 0xc76   :  { %3501 = vmatpush3.bf16.msra.mxu1 %v3657_v17  ;;  %3504 = vmatprep.mubr.msk.bf16.mxu1 %vm4084_vm1, %v4083_v16 }
 0xc77   :  { %3502 = vmatprep.subr.bf16.mxu1 %v4083_v16 }
 0xc7a   :  { %3503 = vmatpush3.bf16.msra.mxu1 %v3658_v19 }
 0xc7b   :  { %3508 = vmatprep.subr.bf16.mxu1 %v4083_v16 }
 0xc7d   :  { %3505 = vmatmul.mubr.msk.bf16.vlgmr.msra.gmra.mxu1 %vm254_vm0, %v1650_v18 }
 0xc7e   :  { %3509 = vmatpush3.bf16.msra.mxu1 %v3659_v20  ;;  %3512 = vmatprep.mubr.msk.bf16.mxu1 %vm4084_vm1, %v4083_v16 }
 0xc7f   :  { %3510 = vmatprep.subr.bf16.mxu1 %v4083_v16 }
 0xc82   :  { %3511 = vmatpush3.bf16.msra.mxu1 %v3660_v21 }
 0xc85   :  { %3513 = vmatmul.mubr.msk.bf16.vlgmr.msra.gmra.mxu1 %vm254_vm0, %v1650_v18 }
 0xd35   :  { %v1713_v24 = vpop.f32.mrf.mxu1 }
 0xd36   :  { %v4576_v25 = vadd.f32 %v3167_v23, %v1713_v24 }
 0xd37   :  { %v3498_v63 = vpop.f32.mrf.mxu1 }
 0xd38   :  { %v1852_v43 = vmul.f32 %v4325_v41, %v4576_v25  ;;  %v2048_v53 = vmul.f32 %v4327_v42, %v4576_v25  ;;  %v2238_v44 = vmul.f32 %v4355_v59, %v4576_v25 }
 0xd39   :  { %v1716_v3 = vpop.f32.mrf.mxu1 }
 0xd3a   :  { %3520 = vmatprep.mubr.msk.f32.mxu1 %vm254_vm0, %v1852_v43  ;;  %3534 = vmatprep.mubr.msk.f32.mxu0 %vm254_vm0, %v2048_v53  ;;  %v4596_v34 = vadd.f32 %v3167_v23, %v1716_v3 }
 0xd3b   :  { %v3499_v26 = vpop.f32.mrf.mxu1 }
 0xd3c   :  { %v1853_v37 = vmul.f32 %v4325_v41, %v4596_v34  ;;  %v2049_v39 = vmul.f32 %v4327_v42, %v4596_v34  ;;  %v2239_v41 = vmul.f32 %v4355_v59, %v4596_v34 }
 0xd3d   :  { %v1779_v27 = vpop.f32.mrf.mxu1 }
 0xd3e   :  { %v4586_v32 = vadd.f32 %v3175_v55, %v1779_v27 }
 0xd3f   :  { %v3506_v28 = vpop.f32.mrf.mxu1 }
 0xd41   :  { %v1782_v29 = vpop.f32.mrf.mxu1 }
 0xd42   :  { %v4584_v57 = vadd.f32 %v3175_v55, %v1782_v29 }
 0xd43   :  { %v3507_v30 = vpop.f32.mrf.mxu1 }
 0xd44   :  { %3516 = vmatprep.subr.msk.mxu1 %vm254_vm0, %v4584_v57  ;;  %3530 = vmatprep.subr.msk.mxu0 %vm254_vm0, %v4584_v57 }
 0xd45   :  { %v1845_v31 = vpop.f32.mrf.mxu1  ;;  %3517 = vmatpush3.xpose.msk.msra.mxu1 %vm254_vm0, %v4584_v57  ;;  %3531 = vmatpush3.xpose.msk.msra.mxu0 %vm254_vm0, %v4584_v57 }
 0xd46   :  { %3518 = vmatprep.subr.msk.mxu1 %vm254_vm0, %v4586_v32  ;;  %3532 = vmatprep.subr.msk.mxu0 %vm254_vm0, %v4586_v32  ;;  %v4618_v45 = vadd.f32 %v3183_v35, %v1845_v31 }
 0xd47   :  { %v3514_v33 = vpop.f32.mrf.mxu1 }
 0xd49   :  { %v1848_v36 = vpop.f32.mrf.mxu1  ;;  %3519 = vmatpush3.xpose.msk.msra.mxu1 %vm254_vm0, %v4586_v32  ;;  %3533 = vmatpush3.xpose.msk.msra.mxu0 %vm254_vm0, %v4586_v32 }
 0xd4a   :  { %v4608_v38 = vadd.f32 %v3183_v35, %v1848_v36  ;;  %3544 = vmatprep.subr.msk.mxu0 %vm254_vm0, %v4584_v57 }
 0xd4b   :  { %v3515_v40 = vpop.f32.mrf.mxu1 }
 0xd4c   :  { %3521 = vmatmul.mubr.msk.f32.vlgmr.msra.gmra.mxu1 %vm254_vm0, %v1853_v37  ;;  %3523 = vmatprep.subr.mxu1 %v4608_v38 }
 0xd4d   :  { %3535 = vmatmul.mubr.msk.f32.vlgmr.msra.gmra.mxu0 %vm254_vm0, %v2049_v39  ;;  %3524 = vmatpush3.msra.mxu1 %v4608_v38 }
 0xd4e   :  { %3545 = vmatpush3.xpose.msk.msra.mxu0 %vm254_vm0, %v4584_v57  ;;  %3548 = vmatprep.mubr.msk.f32.mxu0 %vm254_vm0, %v2238_v44 }
 0xd4f   :  { %3525 = vmatprep.subr.mxu1 %v4618_v45  ;;  %3546 = vmatprep.subr.msk.mxu0 %vm254_vm0, %v4586_v32 }
 0xd50   :  { %3526 = vmatpush3.msra.mxu1 %v4618_v45 }
 0xd51   :  { %3537 = vmatprep.subr.mxu1 %v4608_v38 }
 0xd52   :  { %3547 = vmatpush3.xpose.msk.msra.mxu0 %vm254_vm0, %v4586_v32 }
 0xd53   :  { %3565 = vmatprep.subr.mxu0 %v4608_v38 }
 0xd55   :  { %3549 = vmatmul.mubr.msk.f32.vlgmr.msra.gmra.mxu0 %vm254_vm0, %v2239_v41 }
 0xd56   :  { %3566 = vmatpush3.msra.mxu0 %v4608_v38 }
 0xd57   :  { %3567 = vmatprep.subr.mxu0 %v4618_v45 }
 0xd58   :  { %3568 = vmatpush3.msra.mxu0 %v4618_v45 }
 0xd59   :  { %3572 = vmatprep.subr.bf16.mxu0 %v4083_v16 }
 0xe0c   :  { %v3522_v42 = vpop.f32.mrf.mxu1 }
 0xe0d   :  { %v1938_v46 = vadd.f32 %v3522_v42, %v4395_v5  ;;  %v3536_v47 = vpop.f32.mrf.mxu0 }
 0xe0e   :  { %v1932_v48 = vpop.f32.mrf.mxu1  ;;  %v2128_v49 = vadd.f32 %v3536_v47, %v4395_v5 }
 0xe0f   :  { %v1933_v59 = vadd.f32 %v1932_v48, %v4397_v7  ;;  %v2122_v50 = vpop.f32.mrf.mxu0  ;;  %v1944_v51 = vsel %vm595_vm2, %v1938_v46, -inf }
 0xe10   :  { %1945 = vmax.xlane.f32.xlu1 %v1944_v51  ;;  %v2123_v52 = vadd.f32 %v2122_v50, %v4397_v7  ;;  %v2134_v56 = vsel %vm595_vm2, %v2128_v49, -inf }
 0xe11   :  { %v1941_v54 = vsel %vm595_vm2, %v1933_v59, -inf }
 0xe12   :  { %1942 = vmax.xlane.f32.xlu0 %v1941_v54  ;;  %v2131_v60 = vsel %vm595_vm2, %v2123_v52, -inf }
 0xe14   :  { %2135 = vmax.xlane.f32.xlu1 %v2134_v56 }
 0xe15   :  { %v3550_v58 = vpop.f32.mrf.mxu0 }
 0xe16   :  { %v2318_v61 = vadd.f32 %v3550_v58, %v4395_v5  ;;  %2132 = vmax.xlane.f32.xlu0 %v2131_v60  ;;  %v2428_v60 = vmul.f32 %v4425_v22, %v4576_v25 }
 0xe17   :  { %v2312_v62 = vpop.f32.mrf.mxu0 }
 0xe18   :  { %v2313_v0 = vadd.f32 %v2312_v62, %v4397_v7  ;;  %v2324_v1 = vsel %vm595_vm2, %v2318_v61, -inf }
 0xe19   :  { %2325 = vmax.xlane.f32.xlu1 %v2324_v1 }
 0xe1a   :  { %v2321_v2 = vsel %vm595_vm2, %v2313_v0, -inf }
 0xe1b   :  { %2322 = vmax.xlane.f32.xlu0 %v2321_v2 }
 0xe99   :  { %v1946_v4 = vpop.xlane.xlu1 %1945 }
 0xe9a   :  { %v1948_v6 = vsub.f32 %v1938_v46, %v1946_v4 }
 0xe9b   :  { %v1943_v8 = vpop.xlane.xlu0 %1942 }
 0xe9c   :  { %v1951_v9 = vmul.f32 1.442695, %v1948_v6  ;;  %v1947_v10 = vsub.f32 %v1933_v59, %v1943_v8 }
 0xe9d   :  { %v2136_v11 = vpop.xlane.xlu1 %2135 }
 0xe9e   :  { %3721 = vpow2.f32 %v1951_v9  ;;  %v1949_v12 = vmul.f32 1.442695, %v1947_v10  ;;  %v2138_v13 = vsub.f32 %v2128_v49, %v2136_v11  ;;  %v3767_v9 = vld [vmem:[#allocation8 + $0x2] ss:$0 sm:$0xff] }
 0xe9f   :  { %v2133_v5 = vpop.xlane.xlu0 %2132 }
 0xea0   :  { %3723 = vpow2.f32 %v1949_v12  ;;  %v2141_v17 = vmul.f32 1.442695, %v2138_v13  ;;  %v2137_v18 = vsub.f32 %v2123_v52, %v2133_v5 }
 0xea2   :  { %3725 = vpow2.f32 %v2141_v17  ;;  %v2139_v7 = vmul.f32 1.442695, %v2137_v18  ;;  %v2326_v19 = vpop.xlane.xlu1 %2325  ;;  %v3768_v18 = vld [vmem:[#allocation6 + $0x8] sm:$0xff] }
 0xea3   :  { %v2328_v20 = vsub.f32 %v2318_v61, %v2326_v19  ;;  %v3765_v61 = vld [vmem:[#allocation8] ss:$0 sm:$0xff] }
 0xea4   :  { %3727 = vpow2.f32 %v2139_v7  ;;  %v2323_v21 = vpop.xlane.xlu0 %2322 }
 0xea5   :  { %v2331_v23 = vmul.f32 1.442695, %v2328_v20  ;;  %v2327_v24 = vsub.f32 %v2313_v0, %v2323_v21  ;;  %v3766_v0 = vld [vmem:[#allocation8 + $0x1] ss:$0 sm:$0xff]  ;;  %v3769_v20 = vld [vmem:[#allocation6] sm:$0xff] }
 0xea7   :  { %3729 = vpow2.f32 %v2331_v23  ;;  %v2329_v63 = vmul.f32 1.442695, %v2327_v24 }
 0xea9   :  { %3731 = vpow2.f32 %v2329_v63 }
 0xeab   :  { %v3722_v43 = vpop.eup %3721 }
 0xeac   :  { %v1956_v53 = vsel %vm595_vm2, %v3722_v43, 0.0 }
 0xead   :  { %v3724_v3 = vpop.eup %3723  ;;  %1957 = vadd.xlane.f32.xlu1 %v1956_v53 }
 0xeae   :  { %v1953_v26 = vsel %vm595_vm2, %v3724_v3, 0.0 }
 0xeaf   :  { %v3726_v27 = vpop.eup %3725  ;;  %1954 = vadd.xlane.f32.xlu0 %v1953_v26 }
 0xeb0   :  { %v2146_v28 = vsel %vm595_vm2, %v3726_v27, 0.0 }
 0xeb1   :  { %v3728_v55 = vpop.eup %3727  ;;  %2147 = vadd.xlane.f32.xlu1 %v2146_v28 }
 0xeb2   :  { %v2143_v29 = vsel %vm595_vm2, %v3728_v55, 0.0 }
 0xeb3   :  { %2144 = vadd.xlane.f32.xlu0 %v2143_v29 }
 0xeb4   :  { %v3730_v30 = vpop.eup %3729 }
 0xeb5   :  { %v2336_v31 = vsel %vm595_vm2, %v3730_v30, 0.0 }
 0xeb6   :  { %v3732_v33 = vpop.eup %3731  ;;  %2337 = vadd.xlane.f32.xlu1 %v2336_v31 }
 0xeb7   :  { %v2333_v35 = vsel %vm595_vm2, %v3732_v33, 0.0 }
 0xeb8   :  { %2334 = vadd.xlane.f32.xlu0 %v2333_v35 }
 0xf36   :  { %v1958_v36 = vpop.xlane.xlu1 %1957 }
 0xf37   :  { %3733 = vrcp.f32 %v1958_v36 }
 0xf38   :  { %v1955_v37 = vpop.xlane.xlu0 %1954 }
 0xf39   :  { %3735 = vrcp.f32 %v1955_v37 }
 0xf3a   :  { %v2148_v39 = vpop.xlane.xlu1 %2147 }
 0xf3b   :  { %3737 = vrcp.f32 %v2148_v39 }
 0xf3c   :  { %v2145_v40 = vpop.xlane.xlu0 %2144 }
 0xf3d   :  { %3739 = vrcp.f32 %v2145_v40  ;;  %v3661_v40 = vld [vmem:[%s4792_s11 + $0x18] sm:$0xff]  }
 0xf3f   :  { %v2338_v44 = vpop.xlane.xlu1 %2337 }
 0xf40   :  { %3741 = vrcp.f32 %v2338_v44  ;;  %v3662_v44 = vld [vmem:[%s4792_s11 + $0x10] sm:$0xff]  }
 0xf41   :  { %v2335_v41 = vpop.xlane.xlu0 %2334 }
 0xf42   :  { %3743 = vrcp.f32 %v2335_v41 }
 0xf44   :  { %v3734_v42 = vpop.eup %3733 }
 0xf45   :  { %v1962_v48 = vmul.f32 %v3734_v42, %v3722_v43 }
 0xf46   :  { %v3736_v46 = vpop.eup %3735 }
 0xf47   :  { %v1961_v47 = vmul.f32 %v3736_v46, %v3724_v3 }
 0xf48   :  { %v3738_v49 = vpop.eup %3737 }
 0xf49   :  { %3527 = vmatprep.mubr.msk.f32.mxu1 %vm595_vm2, %v1961_v47  ;;  %v2152_v51 = vmul.f32 %v3738_v49, %v3726_v27 }
 0xf4a   :  { %v3740_v59 = vpop.eup %3739  ;;  %3528 = vmatmul.mubr.msk.f32.vlgmr.msra.gmra.mxu1 %vm595_vm2, %v1962_v48 }
 0xf4b   :  { %3538 = vmatpush3.msra.mxu1 %v4608_v38  ;;  %v2151_v50 = vmul.f32 %v3740_v59, %v3728_v55 }
 0xf4c   :  { %3539 = vmatprep.subr.mxu1 %v4618_v45 }
 0xf4d   :  { %3540 = vmatpush3.msra.mxu1 %v4618_v45  ;;  %3541 = vmatprep.mubr.msk.f32.mxu1 %vm595_vm2, %v2151_v50  ;;  %v3742_v52 = vpop.eup %3741  ;;  %v3215_v50 = vld [vmem:[#allocation17 + $0x1] ss:$0 sm:$0xff] }
 0xf4e   :  { %3551 = vmatprep.subr.mxu1 %v4608_v38  ;;  %3542 = vmatmul.mubr.msk.f32.vlgmr.msra.gmra.mxu1 %vm595_vm2, %v2152_v51  ;;  %v2342_v58 = vmul.f32 %v3742_v52, %v3730_v30 }
 0xf4f   :  { %v3744_v54 = vpop.eup %3743  ;;  %3552 = vmatpush3.msra.mxu1 %v4608_v38  ;;  %v2429_v38 = vmul.f32 %v4425_v22, %v4596_v34 }
 0xf50   :  { %3553 = vmatprep.subr.mxu1 %v4618_v45  ;;  %v2341_v56 = vmul.f32 %v3744_v54, %v3732_v33 }
 0xf51   :  { %3554 = vmatpush3.msra.mxu1 %v4618_v45 }
 0xf52   :  { %3555 = vmatprep.mubr.msk.f32.mxu1 %vm595_vm2, %v2341_v56  ;;  %3558 = vmatprep.subr.msk.mxu1 %vm254_vm0, %v4584_v57 }
 0xf53   :  { %3556 = vmatmul.mubr.msk.f32.vlgmr.msra.gmra.mxu1 %vm595_vm2, %v2342_v58 }
 0xf54   :  { %3559 = vmatpush3.xpose.msk.msra.mxu1 %vm254_vm0, %v4584_v57  ;;  %3562 = vmatprep.mubr.msk.f32.mxu1 %vm254_vm0, %v2428_v60 }
 0xf55   :  { %3560 = vmatprep.subr.msk.mxu1 %vm254_vm0, %v4586_v32 }
 0xf58   :  { %3561 = vmatpush3.xpose.msk.msra.mxu1 %vm254_vm0, %v4586_v32 }
 0xf59   :  { %3580 = vmatprep.subr.bf16.mxu1 %v4083_v16 }
 0xf5b   :  { %3563 = vmatmul.mubr.msk.f32.vlgmr.msra.gmra.mxu1 %vm254_vm0, %v2429_v38 }
 0xf5c   :  { %3584 = vmatprep.mubr.msk.bf16.mxu1 %vm4084_vm1, %v4083_v16 }
0x100a   :  { %v3529_v25 = vpop.f32.mrf.mxu1 }
0x100b   :  { %v2045_v62 = vmul.f32 %v3765_v61, %v3529_v25 }
0x100c   :  { %v2035_v57 = vpop.f32.mrf.mxu1 }
0x100d   :  { %v2044_v4 = vmul.f32 %v3765_v61, %v2035_v57 }
0x100e   :  { %v3543_v45 = vpop.f32.mrf.mxu1 }
0x100f   :  { %v2235_v1 = vmul.f32 %v3766_v0, %v3543_v45 }
0x1010   :  { %v2225_v2 = vpop.f32.mrf.mxu1 }
0x1011   :  { %v2237_v32 = vadd.f32 %v2235_v1, %v2045_v62  ;;  %v2234_v6 = vmul.f32 %v3766_v0, %v2225_v2 }
0x1013   :  { %v2236_v8 = vadd.f32 %v2234_v6, %v2044_v4  ;;  %v3557_v34 = vpop.f32.mrf.mxu1 }
0x1014   :  { %v2425_v10 = vmul.f32 %v3767_v9, %v3557_v34 }
0x1015   :  { %v2415_v11 = vpop.f32.mrf.mxu1 }
0x1016   :  { %v2427_v12 = vadd.f32 %v2425_v10, %v2237_v32  ;;  %v2424_v13 = vmul.f32 %v3767_v9, %v2415_v11 }
0x1018   :  { %v2426_v5 = vadd.f32 %v2424_v13, %v2236_v8  ;;  %v3664_v8 = vld [vmem:[%s4796_s15 + $0x10] sm:$0xff]  }
0x101b   :  { %v3564_v17 = vpop.f32.mrf.mxu1 }
0x101c   :  { %v2508_v7 = vadd.f32 %v3768_v18, %v3564_v17  ;;  %v3219_v18 = vld [vmem:[#allocation18 + $0x1] ss:$0 sm:$0xff] }
0x101d   :  { %v2502_v19 = vpop.f32.mrf.mxu1 }
0x101e   :  { %v2503_v21 = vadd.f32 %v3769_v20, %v2502_v19  ;;  %v2514_v23 = vsel %vm595_vm2, %v2508_v7, -inf }
0x101f   :  { %2515 = vmax.xlane.f32.xlu1 %v2514_v23 }
0x1020   :  { %v2511_v24 = vsel %vm595_vm2, %v2503_v21, -inf }
0x1021   :  { %2512 = vmax.xlane.f32.xlu0 %v2511_v24 }
0x10a8   :  { %v2516_v63 = vpop.xlane.xlu1 %2515 }
0x10a9   :  { %v2518_v43 = vsub.f32 %v2508_v7, %v2516_v63 }
0x10aa   :  { %v2513_v53 = vpop.xlane.xlu0 %2512 }
0x10ab   :  { %v2521_v3 = vmul.f32 1.442695, %v2518_v43  ;;  %v2517_v26 = vsub.f32 %v2503_v21, %v2513_v53  ;;  %v3220_v21 = vld [vmem:[#allocation20 + $0x1] ss:$0 sm:$0xff]  ;;  %v3665_v53 = vld [vmem:[%s4798_s17 + $0x78] sm:$0xff]  }
0x10ad   :  { %3745 = vpow2.f32 %v2521_v3  ;;  %v2519_v27 = vmul.f32 1.442695, %v2517_v26  ;;  %v3666_v3 = vld [vmem:[%s4798_s17 + $0x70] sm:$0xff]   ;;  %v3667_v26 = vld [vmem:[%s4798_s17 + $0x68] sm:$0xff]  }
0x10af   :  { %3747 = vpow2.f32 %v2519_v27  ;;  %v3668_v27 = vld [vmem:[%s4798_s17 + $0x60] sm:$0xff]  }
0x10ba   :  { %v3746_v28 = vpop.eup %3745 }
0x10bb   :  { %v2526_v55 = vsel %vm595_vm2, %v3746_v28, 0.0 }
0x10bc   :  { %v3748_v29 = vpop.eup %3747  ;;  %2527 = vadd.xlane.f32.xlu1 %v2526_v55  ;;  %v3670_v55 = vld [vmem:[%s4798_s17 + $0x50] sm:$0xff]  }
0x10bd   :  { %v2523_v30 = vsel %vm595_vm2, %v3748_v29, 0.0 }
0x10be   :  { %2524 = vadd.xlane.f32.xlu0 %v2523_v30  ;;  %v3672_v30 = vld [vmem:[%s4798_s17 + $0x40] sm:$0xff]  }
0x1145   :  { %v2528_v31 = vpop.xlane.xlu1 %2527 }
0x1146   :  { %3749 = vrcp.f32 %v2528_v31  ;;  %v3225_v31 = vld [vmem:[#allocation21 + $0x1] ss:$0 sm:$0xff] }
0x1147   :  { %v2525_v33 = vpop.xlane.xlu0 %2524 }
0x1148   :  { %3751 = vrcp.f32 %v2525_v33 }
0x1153   :  { %v3750_v35 = vpop.eup %3749 }
0x1154   :  { %v2532_v39 = vmul.f32 %v3750_v35, %v3746_v28  ;;  %v3669_v28 = vld [vmem:[%s4798_s17 + $0x58] sm:$0xff]  }
0x1155   :  { %v3752_v36 = vpop.eup %3751 }
0x1156   :  { %v2531_v37 = vmul.f32 %v3752_v36, %v3748_v29  ;;  %v3671_v29 = vld [vmem:[%s4798_s17 + $0x48] sm:$0xff]  }
0x1158   :  { %3569 = vmatprep.mubr.msk.f32.mxu0 %vm595_vm2, %v2531_v37 }
0x1159   :  { %3570 = vmatmul.mubr.msk.f32.vlgmr.msra.gmra.mxu0 %vm595_vm2, %v2532_v39 }
0x115a   :  { %3576 = vmatprep.mubr.msk.bf16.mxu0 %vm4084_vm1, %v4083_v16  ;;  %3573 = vmatpush3.bf16.msra.mxu0 %v3661_v40 }
0x115b   :  { %3574 = vmatprep.subr.bf16.mxu0 %v4083_v16 }
0x115e   :  { %3575 = vmatpush3.bf16.msra.mxu0 %v3662_v44 }
0x115f   :  { %3588 = vmatprep.subr.bf16.mxu0 %v4083_v16 }
0x1219   :  { %v3571_v41 = vpop.f32.mrf.mxu0 }
0x121a   :  { %v2615_v42 = vmul.f32 %v3571_v41, %v4425_v22 }
0x121b   :  { %v2605_v46 = vpop.f32.mrf.mxu0 }
0x121c   :  { %v2614_v47 = vmul.f32 %v4425_v22, %v2605_v46  ;;  %v2617_v48 = vadd.f32 %v2615_v42, %v2427_v12 }
0x121e   :  { %v2616_v49 = vadd.f32 %v2614_v47, %v2426_v5 }
0x1220   :  { %v2618_v59 = vpack.c.bf16 %v2617_v48, %v2616_v49 }
0x1222   :  { %3577 = vmatmul.mubr.msk.bf16.vlgmr.msra.gmra.mxu0 %vm254_vm0, %v2618_v59 }
0x1223   :  { %3604 = vmatprep.mubr.msk.bf16.mxu0 %vm4084_vm1, %v4083_v16  ;;  %3589 = vmatpush3.bf16.msra.mxu0 %v3665_v53 }
0x1224   :  { %3590 = vmatprep.subr.bf16.mxu0 %v4083_v16 }
0x1227   :  { %3591 = vmatpush3.bf16.msra.mxu0 %v3666_v3 }
0x1228   :  { %3592 = vmatprep.subr.bf16.mxu0 %v4083_v16 }
0x122b   :  { %3593 = vmatpush3.bf16.msra.mxu0 %v3667_v26 }
0x122c   :  { %3594 = vmatprep.subr.bf16.mxu0 %v4083_v16 }
0x122f   :  { %3595 = vmatpush3.bf16.msra.mxu0 %v3668_v27 }
0x1230   :  { %3596 = vmatprep.subr.bf16.mxu0 %v4083_v16 }
0x1233   :  { %3597 = vmatpush3.bf16.msra.mxu0 %v3669_v28  ;;  %v3256_v28 = vld [vmem:[#allocation23 + $0x1] ss:$0 sm:$0xff] }
0x1234   :  { %3598 = vmatprep.subr.bf16.mxu0 %v4083_v16 }
0x1237   :  { %3599 = vmatpush3.bf16.msra.mxu0 %v3670_v55 }
0x1238   :  { %3600 = vmatprep.subr.bf16.mxu0 %v4083_v16 }
0x123b   :  { %3601 = vmatpush3.bf16.msra.mxu0 %v3671_v29  ;;  %v3257_v29 = vld [vmem:[%s4801_s20 + $0x1] ss:$0 sm:$0xff]  ;;  %s4086_s20 = smov [#allocation24]  }
0x123c   :  { %3602 = vmatprep.subr.bf16.mxu0 %v4083_v16  ;;  %s3085_s7 = sshll.u32 %s4086_s20, 4  ;;  %s3086_s7 = int_to_ptr.vmem [resolvable:$true] %s3085_s7 }
0x123d   :  { %s4030_s1 = scalar_lea.vmem %s3086_s7, 16  ;;  %s4034_s11 = scalar_lea.vmem %s3086_s7, 32 }
0x123e   :  { %p4031_p9 = scmp.ne.s32.totalorder %s3086_s7, %s4030_s1  ;;  %p4035_p10 = scmp.lt.s32.totalorder %s3086_s7, %s3086_s7 }
0x123f   :  { %3603 = vmatpush3.bf16.msra.mxu0 %v3672_v30  ;;  %p4036_p11 = scmp.lt.s32.totalorder %s4034_s11, %s4030_s1 }
0x1241   :  { %p4037_p12 = por %p4036_p11, %p4035_p10 }
0x1243   :  { %p4038_p13 = pnand %p4037_p12, %p4031_p9 }
0x12e2   :  { %v2681_v51 = vpop.f32.mrf.mxu0 }
0x12e3   :  { %v2682_v52 = vadd.f32 %v3215_v50, %v2681_v51 }
0x12e4   :  { %v3578_v54 = vpop.f32.mrf.mxu0 }
0x12e5   :  { %v2688_v56 = vadd.f32 %v2682_v52, %v4548_v14 }
0x12e6   :  { %v2684_v58 = vpop.f32.mrf.mxu0 }
0x12e7   :  { %v2685_v60 = vadd.f32 %v3215_v50, %v2684_v58  ;;  %v2694_v38 = vsel %vm254_vm0, %v2688_v56, 0.0 }
0x12e8   :  { %2695 = vadd.xlane.f32.xlu0 %v2694_v38  ;;  %v3579_v22 = vpop.f32.mrf.mxu0 }
0x12e9   :  { %v2689_v25 = vadd.f32 %v2685_v60, %v4550_v15  ;;  %v3663_v15 = vld [vmem:[%s4796_s15 + $0x18] sm:$0xff]  }
0x12ea   :  { %3581 = vmatpush3.bf16.msra.mxu1 %v3663_v15 }
0x12eb   :  { %v2697_v57 = vsel %vm254_vm0, %v2689_v25, 0.0  ;;  %3582 = vmatprep.subr.bf16.mxu1 %v4083_v16 }
0x12ec   :  { %2698 = vadd.xlane.f32.xlu1 %v2697_v57 }
0x12ee   :  { %3583 = vmatpush3.bf16.msra.mxu1 %v3664_v8 }
0x12ef   :  { %3608 = vmatprep.subr.mxu1 %v4083_v16 }
0x1371   :  { %v2696_v45 = vpop.xlane.xlu0 %2695 }
0x1372   :  { %v2700_v61 = vmul.f32 0.03125, %v2696_v45  ;;  %v3246_v45 = vld [vmem:[%s4799_s18 + $0x1] ss:$0 sm:$0xff] }
0x1374   :  { %v2702_v62 = vsub.f32 %v2688_v56, %v2700_v61 }
0x1375   :  { %v2699_v0 = vpop.xlane.xlu1 %2698 }
0x1376   :  { %v2701_v1 = vmul.f32 0.03125, %v2699_v0  ;;  %v2704_v2 = vmul.f32 %v2702_v62, %v2702_v62 }
0x1378   :  { %v2703_v4 = vsub.f32 %v2689_v25, %v2701_v1  ;;  %v2706_v14 = vsel %vm254_vm0, %v2704_v2, 0.0 }
0x1379   :  { %2707 = vadd.xlane.f32.xlu0 %v2706_v14 }
0x137a   :  { %v2705_v32 = vmul.f32 %v2703_v4, %v2703_v4 }
0x137c   :  { %v2709_v6 = vsel %vm254_vm0, %v2705_v32, 0.0 }
0x137d   :  { %2710 = vadd.xlane.f32.xlu1 %v2709_v6 }
0x1402   :  { %v2708_v34 = vpop.xlane.xlu0 %2707 }
0x1403   :  { %v2712_v9 = vmul.f32 0.03125, %v2708_v34 }
0x1405   :  { %v2714_v10 = vadd.f32 1e-12, %v2712_v9 }
0x1406   :  { %v2711_v11 = vpop.xlane.xlu1 %2710 }
0x1407   :  { %3753 = vrsqrt.f32 %v2714_v10  ;;  %v2713_v12 = vmul.f32 0.03125, %v2711_v11 }
0x1409   :  { %v2715_v13 = vadd.f32 1e-12, %v2713_v12 }
0x140b   :  { %3755 = vrsqrt.f32 %v2715_v13 }
0x1414   :  { %v3754_v5 = vpop.eup %3753 }
0x1415   :  { %v2718_v17 = vmul.f32 %v3754_v5, %v2702_v62 }
0x1417   :  { %v2726_v20 = vmul.f32 %v3219_v18, %v2718_v17 }
0x1418   :  { %v3756_v7 = vpop.eup %3755 }
0x1419   :  { %v2719_v19 = vmul.f32 %v3756_v7, %v2703_v4  ;;  %v2734_v24 = vadd.f32 %v3220_v21, %v2726_v20  ;;  %v2988_v7 = vld [vmem:[#allocation2] sm:$0x1] }
0x141b   :  { %v2727_v23 = vmul.f32 %v3219_v18, %v2719_v19  ;;  %v4085_v19 = vmov 0  }
0x141c   :  { %3636 = vset.pattern.permute.xlu0 %v4085_v19 }
0x141d   :  { %v4723_v63 = vadd.f32 %v3220_v21, %v2727_v23 }
0x141f   :  { %v2736_v43 = vpack.c.bf16 %v4723_v63, %v2734_v24 }
0x1421   :  { %3585 = vmatmul.mubr.msk.bf16.vlgmr.msra.gmra.mxu1 %vm254_vm0, %v2736_v43 }
0x1422   :  { %3612 = vmatprep.mubr.msk.f32.mxu1 %vm4084_vm1, %v4083_v16 }
0x14e1   :  { %v2799_v33 = vpop.f32.mrf.mxu1 }
0x14e2   :  { %v2800_v35 = vadd.f32 %v3225_v31, %v2799_v33 }
0x14e3   :  { %v3586_v36 = vpop.f32.mrf.mxu1 }
0x14e4   :  { %v2806_v37 = vmul.f32 %v2800_v35, %v2800_v35  ;;  %v2994_v36 = vlaneseq }
0x14e5   :  { %v2802_v39 = vpop.f32.mrf.mxu1 }
0x14e6   :  { %v2808_v40 = vmul.f32 %v2806_v37, %v2800_v35  ;;  %v2803_v44 = vadd.f32 %v3225_v31, %v2802_v39  ;;  %v2995_v37 = vshrl.u32 %v2994_v36, 7 }
0x14e7   :  { %v3587_v41 = vpop.f32.mrf.mxu1 }
0x14e8   :  { %v2810_v42 = vmul.f32 0.044715, %v2808_v40  ;;  %v2807_v46 = vmul.f32 %v2803_v44, %v2803_v44  ;;  %v2996_v39 = vsub.s32 0, %v2995_v37 }
0x14ea   :  { %v2812_v47 = vadd.f32 %v2810_v42, %v2800_v35  ;;  %v2809_v48 = vmul.f32 %v2807_v46, %v2803_v44 }
0x14ec   :  { %v2814_v49 = vmul.f32 0.7978846, %v2812_v47  ;;  %v2811_v59 = vmul.f32 0.044715, %v2809_v48 }
0x14ee   :  { %3757 = vtanh.f32 %v2814_v49  ;;  %v2813_v50 = vadd.f32 %v2811_v59, %v2803_v44 }
0x14f0   :  { %v2815_v51 = vmul.f32 0.7978846, %v2813_v50 }
0x14f2   :  { %3759 = vtanh.f32 %v2815_v51 }
0x14fb   :  { %v3758_v52 = vpop.eup %3757 }
0x14fc   :  { %v2818_v54 = vadd.f32 1.0, %v3758_v52 }
0x14fe   :  { %v2820_v58 = vmul.f32 0.5, %v2818_v54 }
0x14ff   :  { %v3760_v56 = vpop.eup %3759 }
0x1500   :  { %v2819_v60 = vadd.f32 1.0, %v3760_v56  ;;  %v2822_v22 = vmul.f32 %v2820_v58, %v2800_v35  ;;  %v2987_v35 = vld [vmem:[%s4802_s21] sm:$0x1] }
0x1502   :  { %v2821_v38 = vmul.f32 0.5, %v2819_v60 }
0x1504   :  { %v2823_v25 = vmul.f32 %v2821_v38, %v2803_v44 }
0x1506   :  { %v2824_v57 = vpack.c.bf16 %v2823_v25, %v2822_v22 }
0x1508   :  { %3605 = vmatmul.mubr.bf16.vlgmr.msra.gmra.mxu0 %v2824_v57 }
0x15c8   :  { %v2932_v61 = vpop.f32.mrf.mxu0 }
0x15c9   :  { %v2933_v62 = vadd.f32 %v3246_v45, %v2932_v61 }
0x15ca   :  { %v3606_v0 = vpop.f32.mrf.mxu0 }
0x15cb   :  { %v2939_v1 = vadd.f32 %v2933_v62, %v2734_v24 }
0x15cc   :  { %v2935_v2 = vpop.f32.mrf.mxu0 }
0x15cd   :  { %v2936_v4 = vadd.f32 %v3246_v45, %v2935_v2  ;;  %v2945_v14 = vsel %vm254_vm0, %v2939_v1, 0.0 }
0x15ce   :  { %2946 = vadd.xlane.f32.xlu1 %v2945_v14  ;;  %v3607_v32 = vpop.f32.mrf.mxu0 }
0x15cf   :  { %v2940_v6 = vadd.f32 %v2936_v4, %v4723_v63 }
0x15d1   :  { %v2948_v15 = vsel %vm254_vm0, %v2940_v6, 0.0 }
0x15d2   :  { %2949 = vadd.xlane.f32.xlu0 %v2948_v15 }
0x1657   :  { %v2947_v8 = vpop.xlane.xlu1 %2946 }
0x1658   :  { %v2951_v34 = vmul.f32 0.03125, %v2947_v8 }
0x165a   :  { %v2953_v9 = vsub.f32 %v2939_v1, %v2951_v34 }
0x165b   :  { %v2950_v10 = vpop.xlane.xlu0 %2949 }
0x165c   :  { %v2952_v11 = vmul.f32 0.03125, %v2950_v10  ;;  %v2955_v12 = vmul.f32 %v2953_v9, %v2953_v9 }
0x165e   :  { %v2954_v13 = vsub.f32 %v2940_v6, %v2952_v11  ;;  %v2957_v5 = vsel %vm254_vm0, %v2955_v12, 0.0 }
0x165f   :  { %2958 = vadd.xlane.f32.xlu1 %v2957_v5 }
0x1660   :  { %v2956_v17 = vmul.f32 %v2954_v13, %v2954_v13 }
0x1662   :  { %v2960_v18 = vsel %vm254_vm0, %v2956_v17, 0.0 }
0x1663   :  { %2961 = vadd.xlane.f32.xlu0 %v2960_v18 }
0x1679   :  { %2991 = vperm.xlu0 %3636, %v2988_v7  }
0x16e8   :  { %v2959_v20 = vpop.xlane.xlu1 %2958 }
0x16e9   :  { %v2963_v21 = vmul.f32 0.03125, %v2959_v20 }
0x16eb   :  { %v2965_v23 = vadd.f32 1e-12, %v2963_v21 }
0x16ec   :  { %v2962_v24 = vpop.xlane.xlu0 %2961 }
0x16ed   :  { %v2964_v63 = vmul.f32 0.03125, %v2962_v24  ;;  %3761 = vrsqrt.f32 %v2965_v23 }
0x16ef   :  { %v2966_v43 = vadd.f32 1e-12, %v2964_v63 }
0x16f1   :  { %3763 = vrsqrt.f32 %v2966_v43 }
0x16f4   :  { %v2992_v40 = vpop.permute.xlu0 %2991 }
0x16f5   :  { %v2997_v44 = vrot.slane %v2992_v40, %v2996_v39 }
0x16fa   :  { %v3762_v53 = vpop.eup %3761 }
0x16fb   :  { %v2969_v26 = vmul.f32 %v3762_v53, %v2953_v9 }
0x16fd   :  { %v2977_v31 = vmul.f32 %v3256_v28, %v2969_v26 }
0x16fe   :  { %v3764_v3 = vpop.eup %3763 }
0x16ff   :  { %v2970_v27 = vmul.f32 %v3764_v3, %v2954_v13  ;;  %v2985_v33 = vadd.f32 %v3257_v29, %v2977_v31 }
0x1701   :  { %v2978_v55 = vmul.f32 %v3256_v28, %v2970_v27 }
0x1703   :  { %v2986_v30 = vadd.f32 %v3257_v29, %v2978_v55 }
0x1705   :  { %3609 = vmatpush3.xpose.msk.msra.mxu1 %vm254_vm0, %v2986_v30 }
0x1706   :  { %3610 = vmatprep.subr.mxu1 %v4083_v16 }
0x1709   :  { %3611 = vmatpush3.xpose.msk.msra.mxu1 %vm254_vm0, %v2985_v33 }
0x170c   :  { %3613 = vmatmul.mubr.msk.f32.vlgmr.msra.gmra.mxu1 %vm254_vm0, %v2987_v35 }
0x17cc   :  { %v3073_v41 = vpop.f32.mrf.mxu1 }
0x17cd   :  { %v3074_v42 = vadd.f32 %v3073_v41, %v2997_v44 }
0x17ce   :  { %v3614_v16 = vpop.f32.mrf.mxu1 }
0x17cf   :  { %3078 = vst.msk [vmem:[#allocation24] sm:$0x1] %vm3077_vm3, %v3074_v42 }
0x17d0   :  { %4041 = shalt.err (!%p4038_p13)
}
0x17d1   :  { %3088 = dma.vmem_to_hbm [thread:$0]  %s3086_s7, 16, %s4804_s23, [#allocation5]  }
0x17d2   :  { %4064 = dma.done.wait [#allocation5], 16  }
0x17d3   :  { %4065 = vsyncadd [#allocation5], 4294967280 }
0x17d4   :  { %3092 = vsyncpa [#allocation4], 1 }
0x17d5   :  { %3093 = vsyncpa [#allocation7], 1 }
0x17d6   :  { %3094 = vsyncpa [#allocation10], 1 }
0x17d7   :  { %3095 = vsyncpa [#allocation13], 1 }
0x17d8   :  { %3096 = vsyncpa [#allocation16], 1 }
0x17d9   :  { %3097 = vsyncpa [#allocation19], 1 }
0x17da   :  { %3098 = vsyncpa [#allocation22], 1 }
0x17db   :  { %3099 = vsyncpa [#allocation5], 1 }

</bundles_post_ra>
